<compile_context>
chip_gen: v7x
topology: tpu7x:2x2x1
jax: 0.10.0
libtpu: 0.0.40
codegen_flags: <defaults>
</compile_context>

<pallas_src>
import functools

import jax
import jax.numpy as jnp
from jax import lax
from jax.experimental import pallas as pl
from jax.experimental.pallas import tpu as pltpu

# ----------------------------- configuration -------------------------------
CONF = dict(
    margin=0.6,
    n_desc_words=64,
    emb_size=32,
    n_hidden=32,
    dropout=0.1,                 # eval mode -> identity
    cfg_attn_mode="sigmoid_scalar",
    transform_every_modal=False,
    use_tanh=True,
    use_desc_attn=True,
    transform_attn_out=False,
    sim_measure="cos",
)
B = 2          # batch
N_NODE = 8     # CFG nodes
SEQ = 8        # description length
H = CONF["n_hidden"]
E = CONF["emb_size"]
VOCAB = CONF["n_desc_words"]
GGNN_STEPS = 3
TWO_B = 2 * B
BN = B * N_NODE


def _align128(x):
    return ((x + 127) // 128) * 128


# ----------------------- packed-slab column offsets -------------------------
# weight slab (bf16), H rows
W_GG = 0                              # [W_msg@w_ga | W_gh]   width 6H
W_WH = _align128(W_GG + 6 * H)        # lstm_wh               width 4H
W_SA = _align128(W_WH + 4 * H)        # self_atten_w          width H
W_DA = _align128(W_SA + H)            # desc_attn_w           width H
W_SLAB_W = _align128(W_DA + H)

# bias slab (f32), 1 row
B_MH = 0                              # [zeros(3H) | b_gh]    width 6H
B_MSG = _align128(B_MH + 6 * H)       # b_msg @ w_ga          width 3H
B_GA = _align128(B_MSG + 3 * H)       # b_ga                  width 3H
B_SAB = _align128(B_GA + 3 * H)       # self_atten_b          width H
B_SAWS = _align128(B_SAB + H)         # self_atten_ws         width H
B_SABS = _align128(B_SAWS + H)        # self_atten_bs         width 1
B_LSTM = _align128(B_SABS + 1)        # lstm_b                width 4H
B_DAB = _align128(B_LSTM + 4 * H)     # desc_attn_b           width H
B_DAWS = _align128(B_DAB + H)         # desc_attn_ws          width H
B_DABS = _align128(B_DAWS + H)        # desc_attn_bs          width 1
BIAS_W = _align128(B_DABS + 1)

# code slab (f32), B*N rows
CS_INIT = 0                           # cfg_init flat         width H
CS_MASK = H                           # node mask             width 1
CS_ADJ = _align128(CS_MASK + 1)       # block-diag adjacency  width B*N
CODE_W = CS_ADJ + BN


def _vmem():
    return pl.BlockSpec(memory_space=pltpu.MemorySpace.VMEM)


# --------------------------- fused forward kernel ---------------------------
def fused_forward_kernel(code_ref, ints_ref, w_ref, embwx_ref, bias_ref,
                         out_ref,
                         *, b, n, h, t_len, n_steps, margin, cfg_attn_mode):
    bn = b * n
    two_b = 2 * b
    vocab = embwx_ref.shape[0]
    bf16 = jnp.bfloat16

    # -------- one-time loads / slices of the packed slabs --------
    hid = code_ref[:, CS_INIT:CS_INIT + h]                 # (BN, H) f32
    nmask = code_ref[:, CS_MASK:CS_MASK + 1]               # (BN, 1) f32
    adj_f = code_ref[:, CS_ADJ:CS_ADJ + bn]                # (BN, BN) f32
    adj = adj_f.astype(bf16)

    w_gg = w_ref[:, W_GG:W_GG + 6 * h]                     # (H, 6H) bf16
    wh = w_ref[:, W_WH:W_WH + 4 * h]                       # (H, 4H) bf16
    sa_w = w_ref[:, W_SA:W_SA + h]                         # (H, H)  bf16
    da_w = w_ref[:, W_DA:W_DA + h]                         # (H, H)  bf16

    mh_bias_row = bias_ref[0:1, B_MH:B_MH + 6 * h]         # (1, 6H)
    msg_bias = bias_ref[0:1, B_MSG:B_MSG + 3 * h]          # (1, 3H) = b_msg@w_ga
    b_ga = bias_ref[0:1, B_GA:B_GA + 3 * h]                # (1, 3H)
    sa_b = bias_ref[0:1, B_SAB:B_SAB + h]
    sa_ws = bias_ref[0:1, B_SAWS:B_SAWS + h]
    sa_bs = bias_ref[0:1, B_SABS:B_SABS + 1]
    lstm_b = bias_ref[0:1, B_LSTM:B_LSTM + 4 * h]
    da_b = bias_ref[0:1, B_DAB:B_DAB + h]
    da_ws = bias_ref[0:1, B_DAWS:B_DAWS + h]
    da_bs = bias_ref[0:1, B_DABS:B_DABS + 1]

    # ---------------- GGNN over block-diagonal graph (flat (B*N,H)) ---------
    # Folded form:  ga = adj @ (hid @ (W_msg@w_ga)) + rowsum(adj)*(b_msg@w_ga) + b_ga
    mh_bias = jnp.broadcast_to(mh_bias_row, (bn, 6 * h))          # hoisted
    rowsum = jnp.sum(adj_f, axis=1, keepdims=True)                # (BN, 1)
    ga_bias = rowsum * msg_bias + b_ga                            # (BN, 3H), hoisted
    for _ in range(n_steps):
        mh = jnp.dot(hid.astype(bf16), w_gg,
                     preferred_element_type=jnp.float32) + mh_bias        # (BN, 6H)
        agg = jnp.dot(adj, mh[:, 0:3 * h].astype(bf16),
                      preferred_element_type=jnp.float32)                 # (BN, 3H)
        ga = agg + ga_bias
        z = jax.nn.sigmoid(ga[:, 0:h] + mh[:, 3 * h:4 * h])
        r = jax.nn.sigmoid(ga[:, h:2 * h] + mh[:, 4 * h:5 * h])
        cand = jnp.tanh(ga[:, 2 * h:3 * h] + r * mh[:, 5 * h:6 * h])
        hid = (1.0 - z) * hid + z * cand

    # ---------------- code attention pooling (masked) + tanh ----------------
    s_c = jnp.tanh(jnp.dot(hid.astype(bf16), sa_w,
                           preferred_element_type=jnp.float32) + sa_b)
    score_c = jnp.sum(s_c * sa_ws, axis=-1, keepdims=True) + sa_bs        # (BN, 1)
    if cfg_attn_mode == "sigmoid_scalar":
        wgt = jax.nn.sigmoid(score_c) * nmask                   # unnormalized gating
    else:                                                        # masked softmax
        sc3 = score_c.reshape(b, n, 1)
        m3 = nmask.reshape(b, n, 1)
        sm = jnp.where(m3 > 0.0, sc3, jnp.full_like(sc3, -1e30))
        mmax = jnp.max(sm, axis=1, keepdims=True)
        ex = jnp.exp(sm - mmax) * m3
        den = jnp.sum(ex, axis=1, keepdims=True)
        wgt = (ex * pl.reciprocal(den, approx=True)).reshape(bn, 1)
    pooled_code = jnp.sum((wgt * hid).reshape(b, n, h), axis=1)           # (B, H)
    code_repr = jnp.tanh(pooled_code)

    # ---------------- description: one-hot tokens hit the folded emb@wx -----
    tok = ints_ref[0:t_len * two_b, :]                           # (T*2B, 1) int32
    one_hot = (lax.broadcasted_iota(jnp.int32, (t_len * two_b, vocab), 1)
               == tok).astype(bf16)
    xg_all = jnp.dot(one_hot, embwx_ref[...],
                     preferred_element_type=jnp.float32) + lstm_b         # (T*2B, 4H)

    # ---------------- LSTM recurrence (anchor + neg batched, unrolled) ------
    h_t = jnp.zeros((two_b, h), jnp.float32)
    c_t = jnp.zeros((two_b, h), jnp.float32)
    feats_list = []
    for t in range(t_len):
        gates = xg_all[t * two_b:(t + 1) * two_b, :] \
            + jnp.dot(h_t.astype(bf16), wh,
                      preferred_element_type=jnp.float32)                 # (2B, 4H)
        i_g = jax.nn.sigmoid(gates[:, 0:h])
        f_g = jax.nn.sigmoid(gates[:, h:2 * h])
        g_g = jnp.tanh(gates[:, 2 * h:3 * h])
        o_g = jax.nn.sigmoid(gates[:, 3 * h:4 * h])
        c_t = f_g * c_t + i_g * g_g
        h_t = o_g * jnp.tanh(c_t)
        feats_list.append(h_t)                                   # register-resident
    feats = jnp.stack(feats_list, axis=0)                        # (T, 2B, H)

    # ---------------- masked softmax attention over time + double tanh ------
    f2 = feats.reshape(t_len * two_b, h)
    s_d = jnp.tanh(jnp.dot(f2.astype(bf16), da_w,
                           preferred_element_type=jnp.float32) + da_b)
    s3 = s_d.reshape(t_len, two_b, h)
    score_d = jnp.sum(s3 * da_ws, axis=-1, keepdims=True) + da_bs         # (T, 2B, 1)
    lens = ints_ref[t_len * two_b:t_len * two_b + two_b, :]      # (2B, 1) int32
    t_ids = lax.broadcasted_iota(jnp.int32, (t_len, two_b, 1), 0)
    maskb = t_ids < lens                                         # (T, 2B, 1)
    maskf = maskb.astype(jnp.float32)
    sm_d = jnp.where(maskb, score_d, jnp.full_like(score_d, -1e30))
    mmax_d = jnp.max(sm_d, axis=0, keepdims=True)
    ex_d = jnp.exp(sm_d - mmax_d) * maskf
    den_d = jnp.sum(ex_d, axis=0, keepdims=True)
    attn = ex_d * pl.reciprocal(den_d, approx=True)              # (T, 2B, 1)
    pooled_d = jnp.sum(attn * feats, axis=0)                     # (2B, H)
    desc_repr = jnp.tanh(jnp.tanh(pooled_d))                     # use_tanh + final tanh

    # ---------------- cosine similarity + margin ranking loss ---------------
    d_anc = desc_repr[0:b, :]
    d_neg = desc_repr[b:2 * b, :]

    def cos(u, v):
        dot = jnp.sum(u * v, axis=-1, keepdims=True)
        nu = jnp.maximum(jnp.sum(u * u, axis=-1, keepdims=True), 1e-16)
        nv = jnp.maximum(jnp.sum(v * v, axis=-1, keepdims=True), 1e-16)
        return dot * lax.rsqrt(nu) * lax.rsqrt(nv)

    sim_a = cos(code_repr, d_anc)                                # (B, 1)
    sim_n = cos(code_repr, d_neg)
    vals = jnp.maximum(margin - sim_a + sim_n, 1e-6)
    out_ref[...] = jnp.sum(vals, axis=0, keepdims=True) * (1.0 / b)


# ----------------------------- parameters -----------------------------------
def init_params(key):
    ks = jax.random.split(key, 20)

    def lin(k, i, o, scale=0.08):
        return jax.random.normal(k, (i, o), jnp.float32) * scale

    def vec(k, o, scale=0.05):
        return jax.random.normal(k, (1, o), jnp.float32) * scale

    return dict(
        ggnn_w_msg=lin(ks[0], H, H),
        ggnn_b_msg=vec(ks[1], H),
        ggnn_w_ga=lin(ks[2], H, 3 * H),
        ggnn_w_gh=lin(ks[3], H, 3 * H),
        ggnn_b_ga=vec(ks[4], 3 * H),
        ggnn_b_gh=vec(ks[5], 3 * H),
        emb=jax.random.normal(ks[6], (VOCAB, E), jnp.float32) * 0.1,
        lstm_wx=lin(ks[7], E, 4 * H),
        lstm_wh=lin(ks[8], H, 4 * H),
        lstm_b=vec(ks[9], 4 * H),
        desc_attn_w=lin(ks[10], H, H),
        desc_attn_b=vec(ks[11], H),
        desc_attn_ws=vec(ks[12], H),
        desc_attn_bs=jax.random.normal(ks[13], (1, 1), jnp.float32) * 0.05,
        self_atten_w=lin(ks[14], H, H),
        self_atten_b=vec(ks[15], H),
        self_atten_ws=vec(ks[16], H),
        self_atten_bs=jax.random.normal(ks[17], (1, 1), jnp.float32) * 0.05,
    )


def pack_params(p):
    """Fold weights (W_msg@w_ga, emb@lstm_wx) and pack everything into 3 slabs."""
    w_slab = jnp.zeros((H, W_SLAB_W), jnp.float32)
    w_slab = w_slab.at[:, W_GG:W_GG + 3 * H].set(p["ggnn_w_msg"] @ p["ggnn_w_ga"])
    w_slab = w_slab.at[:, W_GG + 3 * H:W_GG + 6 * H].set(p["ggnn_w_gh"])
    w_slab = w_slab.at[:, W_WH:W_WH + 4 * H].set(p["lstm_wh"])
    w_slab = w_slab.at[:, W_SA:W_SA + H].set(p["self_atten_w"])
    w_slab = w_slab.at[:, W_DA:W_DA + H].set(p["desc_attn_w"])

    embwx = (p["emb"] @ p["lstm_wx"]).astype(jnp.bfloat16)       # (VOCAB, 4H)

    bias = jnp.zeros((1, BIAS_W), jnp.float32)
    bias = bias.at[:, B_MH + 3 * H:B_MH + 6 * H].set(p["ggnn_b_gh"])  # first 3H zero
    bias = bias.at[:, B_MSG:B_MSG + 3 * H].set(p["ggnn_b_msg"] @ p["ggnn_w_ga"])
    bias = bias.at[:, B_GA:B_GA + 3 * H].set(p["ggnn_b_ga"])
    bias = bias.at[:, B_SAB:B_SAB + H].set(p["self_atten_b"])
    bias = bias.at[:, B_SAWS:B_SAWS + H].set(p["self_atten_ws"])
    bias = bias.at[:, B_SABS:B_SABS + 1].set(p["self_atten_bs"])
    bias = bias.at[:, B_LSTM:B_LSTM + 4 * H].set(p["lstm_b"])
    bias = bias.at[:, B_DAB:B_DAB + H].set(p["desc_attn_b"])
    bias = bias.at[:, B_DAWS:B_DAWS + H].set(p["desc_attn_ws"])
    bias = bias.at[:, B_DABS:B_DABS + 1].set(p["desc_attn_bs"])

    return dict(w_slab=w_slab.astype(jnp.bfloat16), embwx=embwx, bias_slab=bias)


# ----------------------------- forward wrapper -------------------------------
@jax.jit
def cfg_embeder_forward(packed, cfg_init, cfg_adj, cfg_node_mask,
                        desc_anchor, desc_anchor_len, desc_neg, desc_neg_len):
    b, n, h = cfg_init.shape
    t = desc_anchor.shape[1]
    two_b = 2 * b
    bn = b * n

    # block-diagonal adjacency -> GGNN propagation is one flat 2-D matmul/step
    adj_bd = jnp.zeros((bn, bn), jnp.float32)
    for i in range(b):
        adj_bd = adj_bd.at[i * n:(i + 1) * n, i * n:(i + 1) * n].set(
            cfg_adj[i].astype(jnp.float32))

    # single (BN, CODE_W) data slab: [cfg_init | node_mask | adj]
    code_slab = jnp.zeros((bn, CODE_W), jnp.float32)
    code_slab = code_slab.at[:, CS_INIT:CS_INIT + h].set(cfg_init.reshape(bn, h))
    code_slab = code_slab.at[:, CS_MASK:CS_MASK + 1].set(
        cfg_node_mask.astype(jnp.float32).reshape(bn, 1))
    code_slab = code_slab.at[:, CS_ADJ:CS_ADJ + bn].set(adj_bd)

    # anchor + negative batched; tokens time-major, lengths appended as rows
    tokens = jnp.concatenate([desc_anchor, desc_neg], axis=0)             # (2B, T)
    tokens_tm = jnp.transpose(tokens, (1, 0)).reshape(t * two_b, 1).astype(jnp.int32)
    lens = jnp.concatenate([desc_anchor_len, desc_neg_len], axis=0)
    lens = lens.astype(jnp.int32).reshape(two_b, 1)
    ints = jnp.concatenate([tokens_tm, lens], axis=0)                     # (T*2B+2B, 1)

    kern = functools.partial(fused_forward_kernel,
                             b=b, n=n, h=h, t_len=t,
                             n_steps=GGNN_STEPS,
                             margin=CONF["margin"],
                             cfg_attn_mode=CONF["cfg_attn_mode"])
    out = pl.pallas_call(
        kern,
        out_shape=jax.ShapeDtypeStruct((1, 1), jnp.float32),
        in_specs=[_vmem()] * 5,
        out_specs=_vmem(),
    )(code_slab, ints, packed["w_slab"], packed["embwx"], packed["bias_slab"])
    return out[0, 0]


# --------------------------------- main ---------------------------------------
if __name__ == "__main__":
    key = jax.random.PRNGKey(0)
    pkey, k1, k2, k3, k4 = jax.random.split(key, 5)
    params = init_params(pkey)
    packed = pack_params(params)          # weight folding + slab packing, done once

    cfg_init = jax.random.normal(k1, (B, N_NODE, H), jnp.float32)
    cfg_adj = (jax.random.uniform(k2, (B, N_NODE, N_NODE)) < 0.3).astype(jnp.float32)
    cfg_node_mask = jnp.array(
        [[1, 1, 1, 1, 1, 1, 0, 0],
         [1, 1, 1, 1, 1, 1, 1, 1]], dtype=jnp.float32)

    desc_anchor = jax.random.randint(k3, (B, SEQ), 0, VOCAB, dtype=jnp.int32)
    desc_anchor_len = jnp.array([5, 8], dtype=jnp.int32)
    desc_neg = jax.random.randint(k4, (B, SEQ), 0, VOCAB, dtype=jnp.int32)
    desc_neg_len = jnp.array([7, 4], dtype=jnp.int32)

    loss = cfg_embeder_forward(packed, cfg_init, cfg_adj, cfg_node_mask,
                               desc_anchor, desc_anchor_len,
                               desc_neg, desc_neg_len)
    loss = jax.block_until_ready(loss)
    assert loss.shape == () and bool(jnp.isfinite(loss))
    print("KERNEL_OK")
</pallas_src>

<mosaic_0001>
module attributes {stable_mosaic.version = 11 : i64} {
  func.func @fused_forward_kernel(%arg0: memref<16x144xf32, #tpu.memory_space<vmem>>, %arg1: memref<36x1xi32, #tpu.memory_space<vmem>>, %arg2: memref<32x640xbf16, #tpu.memory_space<vmem>>, %arg3: memref<64x128xbf16, #tpu.memory_space<vmem>>, %arg4: memref<1x1408xf32, #tpu.memory_space<vmem>>, %arg5: memref<1x1xf32, #tpu.memory_space<vmem>>) attributes {dimension_semantics = [], scalar_prefetch = 0 : i64, scratch_operands = 0 : i64, tpu.core_type = #tpu.core_type<tc>} {
    %c0 = arith.constant 0 : index
    %c0_0 = arith.constant 0 : index
    %0 = vector.load %arg0[%c0, %c0_0] : memref<16x144xf32, #tpu.memory_space<vmem>>, vector<16x32xf32>
    %c0_1 = arith.constant 0 : index
    %c32 = arith.constant 32 : index
    %1 = vector.load %arg0[%c0_1, %c32] : memref<16x144xf32, #tpu.memory_space<vmem>>, vector<16x1xf32>
    %c0_2 = arith.constant 0 : index
    %c128 = arith.constant 128 : index
    %2 = vector.load %arg0[%c0_2, %c128] : memref<16x144xf32, #tpu.memory_space<vmem>>, vector<16x16xf32>
    %3 = arith.truncf %2 : vector<16x16xf32> to vector<16x16xbf16>
    %c0_3 = arith.constant 0 : index
    %c0_4 = arith.constant 0 : index
    %4 = vector.load %arg2[%c0_3, %c0_4] : memref<32x640xbf16, #tpu.memory_space<vmem>>, vector<32x192xbf16>
    %c0_5 = arith.constant 0 : index
    %c256 = arith.constant 256 : index
    %5 = vector.load %arg2[%c0_5, %c256] : memref<32x640xbf16, #tpu.memory_space<vmem>>, vector<32x128xbf16>
    %c0_6 = arith.constant 0 : index
    %c384 = arith.constant 384 : index
    %6 = vector.load %arg2[%c0_6, %c384] : memref<32x640xbf16, #tpu.memory_space<vmem>>, vector<32x32xbf16>
    %c0_7 = arith.constant 0 : index
    %c512 = arith.constant 512 : index
    %7 = vector.load %arg2[%c0_7, %c512] : memref<32x640xbf16, #tpu.memory_space<vmem>>, vector<32x32xbf16>
    %c0_8 = arith.constant 0 : index
    %c0_9 = arith.constant 0 : index
    %8 = vector.load %arg4[%c0_8, %c0_9] : memref<1x1408xf32, #tpu.memory_space<vmem>>, vector<1x192xf32>
    %c0_10 = arith.constant 0 : index
    %c256_11 = arith.constant 256 : index
    %9 = vector.load %arg4[%c0_10, %c256_11] : memref<1x1408xf32, #tpu.memory_space<vmem>>, vector<1x96xf32>
    %c0_12 = arith.constant 0 : index
    %c384_13 = arith.constant 384 : index
    %10 = vector.load %arg4[%c0_12, %c384_13] : memref<1x1408xf32, #tpu.memory_space<vmem>>, vector<1x96xf32>
    %c0_14 = arith.constant 0 : index
    %c512_15 = arith.constant 512 : index
    %11 = vector.load %arg4[%c0_14, %c512_15] : memref<1x1408xf32, #tpu.memory_space<vmem>>, vector<1x32xf32>
    %c0_16 = arith.constant 0 : index
    %c640 = arith.constant 640 : index
    %12 = vector.load %arg4[%c0_16, %c640] : memref<1x1408xf32, #tpu.memory_space<vmem>>, vector<1x32xf32>
    %c0_17 = arith.constant 0 : index
    %c768 = arith.constant 768 : index
    %13 = vector.load %arg4[%c0_17, %c768] : memref<1x1408xf32, #tpu.memory_space<vmem>>, vector<1x1xf32>
    %c0_18 = arith.constant 0 : index
    %c896 = arith.constant 896 : index
    %14 = vector.load %arg4[%c0_18, %c896] : memref<1x1408xf32, #tpu.memory_space<vmem>>, vector<1x128xf32>
    %c0_19 = arith.constant 0 : index
    %c1024 = arith.constant 1024 : index
    %15 = vector.load %arg4[%c0_19, %c1024] : memref<1x1408xf32, #tpu.memory_space<vmem>>, vector<1x32xf32>
    %c0_20 = arith.constant 0 : index
    %c1152 = arith.constant 1152 : index
    %16 = vector.load %arg4[%c0_20, %c1152] : memref<1x1408xf32, #tpu.memory_space<vmem>>, vector<1x32xf32>
    %c0_21 = arith.constant 0 : index
    %c1280 = arith.constant 1280 : index
    %17 = vector.load %arg4[%c0_21, %c1280] : memref<1x1408xf32, #tpu.memory_space<vmem>>, vector<1x1xf32>
    %18 = vector.shape_cast %8 : vector<1x192xf32> to vector<1x192xf32>
    %19 = vector.broadcast %18 : vector<1x192xf32> to vector<16x192xf32>
    %cst = arith.constant dense<0.000000e+00> : vector<16xf32>
    %20 = vector.multi_reduction <add>, %2, %cst [1] : vector<16x16xf32> to vector<16xf32>
    %21 = vector.shape_cast %20 : vector<16xf32> to vector<16x1xf32>
    %22 = vector.broadcast %21 : vector<16x1xf32> to vector<16x96xf32>
    %23 = vector.broadcast %9 : vector<1x96xf32> to vector<16x96xf32>
    %24 = arith.mulf %22, %23 : vector<16x96xf32>
    %25 = vector.broadcast %10 : vector<1x96xf32> to vector<16x96xf32>
    %26 = arith.addf %24, %25 : vector<16x96xf32>
    %27 = arith.truncf %0 : vector<16x32xf32> to vector<16x32xbf16>
    %cst_22 = arith.constant dense<0.000000e+00> : vector<16x192xf32>
    %28 = tpu.matmul %27, %4, %cst_22 {dimension_numbers = #tpu.dot_dimension_numbers<[1], [0], [0], [1], [0, 0, 1, 1], [], []>} : vector<16x32xbf16>, vector<32x192xbf16>, vector<16x192xf32> -> vector<16x192xf32>
    %29 = arith.addf %28, %19 : vector<16x192xf32>
    %30 = vector.extract_strided_slice %29 {offsets = [0, 0], sizes = [16, 96], strides = [1, 1]} : vector<16x192xf32> to vector<16x96xf32>
    %31 = arith.truncf %30 : vector<16x96xf32> to vector<16x96xbf16>
    %cst_23 = arith.constant dense<0.000000e+00> : vector<16x96xf32>
    %32 = tpu.matmul %3, %31, %cst_23 {dimension_numbers = #tpu.dot_dimension_numbers<[1], [0], [0], [1], [0, 0, 1, 1], [], []>} : vector<16x16xbf16>, vector<16x96xbf16>, vector<16x96xf32> -> vector<16x96xf32>
    %33 = arith.addf %32, %26 : vector<16x96xf32>
    %34 = vector.extract_strided_slice %33 {offsets = [0, 0], sizes = [16, 32], strides = [1, 1]} : vector<16x96xf32> to vector<16x32xf32>
    %35 = vector.extract_strided_slice %29 {offsets = [0, 96], sizes = [16, 32], strides = [1, 1]} : vector<16x192xf32> to vector<16x32xf32>
    %36 = arith.addf %34, %35 : vector<16x32xf32>
    %37 = arith.negf %36 : vector<16x32xf32>
    %38 = math.exp %37 : vector<16x32xf32>
    %cst_24 = arith.constant 1.000000e+00 : f32
    %39 = vector.broadcast %cst_24 : f32 to vector<16x32xf32>
    %40 = arith.addf %39, %38 : vector<16x32xf32>
    %41 = arith.divf %39, %40 : vector<16x32xf32>
    %42 = vector.extract_strided_slice %33 {offsets = [0, 32], sizes = [16, 32], strides = [1, 1]} : vector<16x96xf32> to vector<16x32xf32>
    %43 = vector.extract_strided_slice %29 {offsets = [0, 128], sizes = [16, 32], strides = [1, 1]} : vector<16x192xf32> to vector<16x32xf32>
    %44 = arith.addf %42, %43 : vector<16x32xf32>
    %45 = arith.negf %44 : vector<16x32xf32>
    %46 = math.exp %45 : vector<16x32xf32>
    %cst_25 = arith.constant 1.000000e+00 : f32
    %47 = vector.broadcast %cst_25 : f32 to vector<16x32xf32>
    %48 = arith.addf %47, %46 : vector<16x32xf32>
    %49 = arith.divf %47, %48 : vector<16x32xf32>
    %50 = vector.extract_strided_slice %33 {offsets = [0, 64], sizes = [16, 32], strides = [1, 1]} : vector<16x96xf32> to vector<16x32xf32>
    %51 = vector.extract_strided_slice %29 {offsets = [0, 160], sizes = [16, 32], strides = [1, 1]} : vector<16x192xf32> to vector<16x32xf32>
    %52 = arith.mulf %49, %51 : vector<16x32xf32>
    %53 = arith.addf %50, %52 : vector<16x32xf32>
    %54 = math.tanh %53 : vector<16x32xf32>
    %cst_26 = arith.constant 1.000000e+00 : f32
    %55 = vector.broadcast %cst_26 : f32 to vector<16x32xf32>
    %56 = arith.subf %55, %41 : vector<16x32xf32>
    %57 = arith.mulf %56, %0 : vector<16x32xf32>
    %58 = arith.mulf %41, %54 : vector<16x32xf32>
    %59 = arith.addf %57, %58 : vector<16x32xf32>
    %60 = arith.truncf %59 : vector<16x32xf32> to vector<16x32xbf16>
    %cst_27 = arith.constant dense<0.000000e+00> : vector<16x192xf32>
    %61 = tpu.matmul %60, %4, %cst_27 {dimension_numbers = #tpu.dot_dimension_numbers<[1], [0], [0], [1], [0, 0, 1, 1], [], []>} : vector<16x32xbf16>, vector<32x192xbf16>, vector<16x192xf32> -> vector<16x192xf32>
    %62 = arith.addf %61, %19 : vector<16x192xf32>
    %63 = vector.extract_strided_slice %62 {offsets = [0, 0], sizes = [16, 96], strides = [1, 1]} : vector<16x192xf32> to vector<16x96xf32>
    %64 = arith.truncf %63 : vector<16x96xf32> to vector<16x96xbf16>
    %cst_28 = arith.constant dense<0.000000e+00> : vector<16x96xf32>
    %65 = tpu.matmul %3, %64, %cst_28 {dimension_numbers = #tpu.dot_dimension_numbers<[1], [0], [0], [1], [0, 0, 1, 1], [], []>} : vector<16x16xbf16>, vector<16x96xbf16>, vector<16x96xf32> -> vector<16x96xf32>
    %66 = arith.addf %65, %26 : vector<16x96xf32>
    %67 = vector.extract_strided_slice %66 {offsets = [0, 0], sizes = [16, 32], strides = [1, 1]} : vector<16x96xf32> to vector<16x32xf32>
    %68 = vector.extract_strided_slice %62 {offsets = [0, 96], sizes = [16, 32], strides = [1, 1]} : vector<16x192xf32> to vector<16x32xf32>
    %69 = arith.addf %67, %68 : vector<16x32xf32>
    %70 = arith.negf %69 : vector<16x32xf32>
    %71 = math.exp %70 : vector<16x32xf32>
    %cst_29 = arith.constant 1.000000e+00 : f32
    %72 = vector.broadcast %cst_29 : f32 to vector<16x32xf32>
    %73 = arith.addf %72, %71 : vector<16x32xf32>
    %74 = arith.divf %72, %73 : vector<16x32xf32>
    %75 = vector.extract_strided_slice %66 {offsets = [0, 32], sizes = [16, 32], strides = [1, 1]} : vector<16x96xf32> to vector<16x32xf32>
    %76 = vector.extract_strided_slice %62 {offsets = [0, 128], sizes = [16, 32], strides = [1, 1]} : vector<16x192xf32> to vector<16x32xf32>
    %77 = arith.addf %75, %76 : vector<16x32xf32>
    %78 = arith.negf %77 : vector<16x32xf32>
    %79 = math.exp %78 : vector<16x32xf32>
    %cst_30 = arith.constant 1.000000e+00 : f32
    %80 = vector.broadcast %cst_30 : f32 to vector<16x32xf32>
    %81 = arith.addf %80, %79 : vector<16x32xf32>
    %82 = arith.divf %80, %81 : vector<16x32xf32>
    %83 = vector.extract_strided_slice %66 {offsets = [0, 64], sizes = [16, 32], strides = [1, 1]} : vector<16x96xf32> to vector<16x32xf32>
    %84 = vector.extract_strided_slice %62 {offsets = [0, 160], sizes = [16, 32], strides = [1, 1]} : vector<16x192xf32> to vector<16x32xf32>
    %85 = arith.mulf %82, %84 : vector<16x32xf32>
    %86 = arith.addf %83, %85 : vector<16x32xf32>
    %87 = math.tanh %86 : vector<16x32xf32>
    %cst_31 = arith.constant 1.000000e+00 : f32
    %88 = vector.broadcast %cst_31 : f32 to vector<16x32xf32>
    %89 = arith.subf %88, %74 : vector<16x32xf32>
    %90 = arith.mulf %89, %59 : vector<16x32xf32>
    %91 = arith.mulf %74, %87 : vector<16x32xf32>
    %92 = arith.addf %90, %91 : vector<16x32xf32>
    %93 = arith.truncf %92 : vector<16x32xf32> to vector<16x32xbf16>
    %cst_32 = arith.constant dense<0.000000e+00> : vector<16x192xf32>
    %94 = tpu.matmul %93, %4, %cst_32 {dimension_numbers = #tpu.dot_dimension_numbers<[1], [0], [0], [1], [0, 0, 1, 1], [], []>} : vector<16x32xbf16>, vector<32x192xbf16>, vector<16x192xf32> -> vector<16x192xf32>
    %95 = arith.addf %94, %19 : vector<16x192xf32>
    %96 = vector.extract_strided_slice %95 {offsets = [0, 0], sizes = [16, 96], strides = [1, 1]} : vector<16x192xf32> to vector<16x96xf32>
    %97 = arith.truncf %96 : vector<16x96xf32> to vector<16x96xbf16>
    %cst_33 = arith.constant dense<0.000000e+00> : vector<16x96xf32>
    %98 = tpu.matmul %3, %97, %cst_33 {dimension_numbers = #tpu.dot_dimension_numbers<[1], [0], [0], [1], [0, 0, 1, 1], [], []>} : vector<16x16xbf16>, vector<16x96xbf16>, vector<16x96xf32> -> vector<16x96xf32>
    %99 = arith.addf %98, %26 : vector<16x96xf32>
    %100 = vector.extract_strided_slice %99 {offsets = [0, 0], sizes = [16, 32], strides = [1, 1]} : vector<16x96xf32> to vector<16x32xf32>
    %101 = vector.extract_strided_slice %95 {offsets = [0, 96], sizes = [16, 32], strides = [1, 1]} : vector<16x192xf32> to vector<16x32xf32>
    %102 = arith.addf %100, %101 : vector<16x32xf32>
    %103 = arith.negf %102 : vector<16x32xf32>
    %104 = math.exp %103 : vector<16x32xf32>
    %cst_34 = arith.constant 1.000000e+00 : f32
    %105 = vector.broadcast %cst_34 : f32 to vector<16x32xf32>
    %106 = arith.addf %105, %104 : vector<16x32xf32>
    %107 = arith.divf %105, %106 : vector<16x32xf32>
    %108 = vector.extract_strided_slice %99 {offsets = [0, 32], sizes = [16, 32], strides = [1, 1]} : vector<16x96xf32> to vector<16x32xf32>
    %109 = vector.extract_strided_slice %95 {offsets = [0, 128], sizes = [16, 32], strides = [1, 1]} : vector<16x192xf32> to vector<16x32xf32>
    %110 = arith.addf %108, %109 : vector<16x32xf32>
    %111 = arith.negf %110 : vector<16x32xf32>
    %112 = math.exp %111 : vector<16x32xf32>
    %cst_35 = arith.constant 1.000000e+00 : f32
    %113 = vector.broadcast %cst_35 : f32 to vector<16x32xf32>
    %114 = arith.addf %113, %112 : vector<16x32xf32>
    %115 = arith.divf %113, %114 : vector<16x32xf32>
    %116 = vector.extract_strided_slice %99 {offsets = [0, 64], sizes = [16, 32], strides = [1, 1]} : vector<16x96xf32> to vector<16x32xf32>
    %117 = vector.extract_strided_slice %95 {offsets = [0, 160], sizes = [16, 32], strides = [1, 1]} : vector<16x192xf32> to vector<16x32xf32>
    %118 = arith.mulf %115, %117 : vector<16x32xf32>
    %119 = arith.addf %116, %118 : vector<16x32xf32>
    %120 = math.tanh %119 : vector<16x32xf32>
    %cst_36 = arith.constant 1.000000e+00 : f32
    %121 = vector.broadcast %cst_36 : f32 to vector<16x32xf32>
    %122 = arith.subf %121, %107 : vector<16x32xf32>
    %123 = arith.mulf %122, %92 : vector<16x32xf32>
    %124 = arith.mulf %107, %120 : vector<16x32xf32>
    %125 = arith.addf %123, %124 : vector<16x32xf32>
    %126 = arith.truncf %125 : vector<16x32xf32> to vector<16x32xbf16>
    %cst_37 = arith.constant dense<0.000000e+00> : vector<16x32xf32>
    %127 = tpu.matmul %126, %6, %cst_37 {dimension_numbers = #tpu.dot_dimension_numbers<[1], [0], [0], [1], [0, 0, 1, 1], [], []>} : vector<16x32xbf16>, vector<32x32xbf16>, vector<16x32xf32> -> vector<16x32xf32>
    %128 = vector.broadcast %11 : vector<1x32xf32> to vector<16x32xf32>
    %129 = arith.addf %127, %128 : vector<16x32xf32>
    %130 = math.tanh %129 : vector<16x32xf32>
    %131 = vector.broadcast %12 : vector<1x32xf32> to vector<16x32xf32>
    %132 = arith.mulf %130, %131 : vector<16x32xf32>
    %cst_38 = arith.constant dense<0.000000e+00> : vector<16xf32>
    %133 = vector.multi_reduction <add>, %132, %cst_38 [1] : vector<16x32xf32> to vector<16xf32>
    %134 = vector.shape_cast %133 : vector<16xf32> to vector<16x1xf32>
    %135 = vector.broadcast %13 : vector<1x1xf32> to vector<16x1xf32>
    %136 = arith.addf %134, %135 : vector<16x1xf32>
    %137 = arith.negf %136 : vector<16x1xf32>
    %138 = math.exp %137 : vector<16x1xf32>
    %cst_39 = arith.constant 1.000000e+00 : f32
    %139 = vector.broadcast %cst_39 : f32 to vector<16x1xf32>
    %140 = arith.addf %139, %138 : vector<16x1xf32>
    %141 = arith.divf %139, %140 : vector<16x1xf32>
    %142 = arith.mulf %141, %1 : vector<16x1xf32>
    %143 = vector.broadcast %142 : vector<16x1xf32> to vector<16x32xf32>
    %144 = arith.mulf %143, %125 : vector<16x32xf32>
    %145 = vector.shape_cast %144 : vector<16x32xf32> to vector<2x8x32xf32>
    %cst_40 = arith.constant dense<0.000000e+00> : vector<2x32xf32>
    %146 = vector.multi_reduction <add>, %145, %cst_40 [1] : vector<2x8x32xf32> to vector<2x32xf32>
    %147 = math.tanh %146 : vector<2x32xf32>
    %c0_41 = arith.constant 0 : index
    %c0_42 = arith.constant 0 : index
    %148 = vector.load %arg1[%c0_41, %c0_42] : memref<36x1xi32, #tpu.memory_space<vmem>>, vector<32x1xi32>
    %149 = tpu.iota {dimensions = array<i32: 1>} : vector<32x64xi32>
    %150 = vector.broadcast %148 : vector<32x1xi32> to vector<32x64xi32>
    %151 = arith.cmpi eq, %149, %150 : vector<32x64xi32>
    %152 = arith.extui %151 : vector<32x64xi1> to vector<32x64xi32>
    %153 = arith.sitofp %152 : vector<32x64xi32> to vector<32x64xf32>
    %154 = arith.truncf %153 : vector<32x64xf32> to vector<32x64xbf16>
    %c0_43 = arith.constant 0 : index
    %c0_44 = arith.constant 0 : index
    %155 = vector.load %arg3[%c0_43, %c0_44] : memref<64x128xbf16, #tpu.memory_space<vmem>>, vector<64x128xbf16>
    %cst_45 = arith.constant dense<0.000000e+00> : vector<32x128xf32>
    %156 = tpu.matmul %154, %155, %cst_45 {dimension_numbers = #tpu.dot_dimension_numbers<[1], [0], [0], [1], [0, 0, 1, 1], [], []>} : vector<32x64xbf16>, vector<64x128xbf16>, vector<32x128xf32> -> vector<32x128xf32>
    %157 = vector.broadcast %14 : vector<1x128xf32> to vector<32x128xf32>
    %158 = arith.addf %156, %157 : vector<32x128xf32>
    %cst_46 = arith.constant 0.000000e+00 : f32
    %159 = vector.broadcast %cst_46 : f32 to vector<4x32xf32>
    %cst_47 = arith.constant 0.000000e+00 : f32
    %160 = vector.broadcast %cst_47 : f32 to vector<4x32xf32>
    %161 = vector.extract_strided_slice %158 {offsets = [0, 0], sizes = [4, 128], strides = [1, 1]} : vector<32x128xf32> to vector<4x128xf32>
    %162 = arith.truncf %159 : vector<4x32xf32> to vector<4x32xbf16>
    %cst_48 = arith.constant dense<0.000000e+00> : vector<4x128xf32>
    %163 = tpu.matmul %162, %5, %cst_48 {dimension_numbers = #tpu.dot_dimension_numbers<[1], [0], [0], [1], [0, 0, 1, 1], [], []>} : vector<4x32xbf16>, vector<32x128xbf16>, vector<4x128xf32> -> vector<4x128xf32>
    %164 = arith.addf %161, %163 : vector<4x128xf32>
    %165 = vector.extract_strided_slice %164 {offsets = [0, 0], sizes = [4, 32], strides = [1, 1]} : vector<4x128xf32> to vector<4x32xf32>
    %166 = arith.negf %165 : vector<4x32xf32>
    %167 = math.exp %166 : vector<4x32xf32>
    %cst_49 = arith.constant 1.000000e+00 : f32
    %168 = vector.broadcast %cst_49 : f32 to vector<4x32xf32>
    %169 = arith.addf %168, %167 : vector<4x32xf32>
    %170 = arith.divf %168, %169 : vector<4x32xf32>
    %171 = vector.extract_strided_slice %164 {offsets = [0, 32], sizes = [4, 32], strides = [1, 1]} : vector<4x128xf32> to vector<4x32xf32>
    %172 = arith.negf %171 : vector<4x32xf32>
    %173 = math.exp %172 : vector<4x32xf32>
    %cst_50 = arith.constant 1.000000e+00 : f32
    %174 = vector.broadcast %cst_50 : f32 to vector<4x32xf32>
    %175 = arith.addf %174, %173 : vector<4x32xf32>
    %176 = arith.divf %174, %175 : vector<4x32xf32>
    %177 = vector.extract_strided_slice %164 {offsets = [0, 64], sizes = [4, 32], strides = [1, 1]} : vector<4x128xf32> to vector<4x32xf32>
    %178 = math.tanh %177 : vector<4x32xf32>
    %179 = vector.extract_strided_slice %164 {offsets = [0, 96], sizes = [4, 32], strides = [1, 1]} : vector<4x128xf32> to vector<4x32xf32>
    %180 = arith.negf %179 : vector<4x32xf32>
    %181 = math.exp %180 : vector<4x32xf32>
    %cst_51 = arith.constant 1.000000e+00 : f32
    %182 = vector.broadcast %cst_51 : f32 to vector<4x32xf32>
    %183 = arith.addf %182, %181 : vector<4x32xf32>
    %184 = arith.divf %182, %183 : vector<4x32xf32>
    %185 = arith.mulf %176, %160 : vector<4x32xf32>
    %186 = arith.mulf %170, %178 : vector<4x32xf32>
    %187 = arith.addf %185, %186 : vector<4x32xf32>
    %188 = math.tanh %187 : vector<4x32xf32>
    %189 = arith.mulf %184, %188 : vector<4x32xf32>
    %190 = vector.extract_strided_slice %158 {offsets = [4, 0], sizes = [4, 128], strides = [1, 1]} : vector<32x128xf32> to vector<4x128xf32>
    %191 = arith.truncf %189 : vector<4x32xf32> to vector<4x32xbf16>
    %cst_52 = arith.constant dense<0.000000e+00> : vector<4x128xf32>
    %192 = tpu.matmul %191, %5, %cst_52 {dimension_numbers = #tpu.dot_dimension_numbers<[1], [0], [0], [1], [0, 0, 1, 1], [], []>} : vector<4x32xbf16>, vector<32x128xbf16>, vector<4x128xf32> -> vector<4x128xf32>
    %193 = arith.addf %190, %192 : vector<4x128xf32>
    %194 = vector.extract_strided_slice %193 {offsets = [0, 0], sizes = [4, 32], strides = [1, 1]} : vector<4x128xf32> to vector<4x32xf32>
    %195 = arith.negf %194 : vector<4x32xf32>
    %196 = math.exp %195 : vector<4x32xf32>
    %cst_53 = arith.constant 1.000000e+00 : f32
    %197 = vector.broadcast %cst_53 : f32 to vector<4x32xf32>
    %198 = arith.addf %197, %196 : vector<4x32xf32>
    %199 = arith.divf %197, %198 : vector<4x32xf32>
    %200 = vector.extract_strided_slice %193 {offsets = [0, 32], sizes = [4, 32], strides = [1, 1]} : vector<4x128xf32> to vector<4x32xf32>
    %201 = arith.negf %200 : vector<4x32xf32>
    %202 = math.exp %201 : vector<4x32xf32>
    %cst_54 = arith.constant 1.000000e+00 : f32
    %203 = vector.broadcast %cst_54 : f32 to vector<4x32xf32>
    %204 = arith.addf %203, %202 : vector<4x32xf32>
    %205 = arith.divf %203, %204 : vector<4x32xf32>
    %206 = vector.extract_strided_slice %193 {offsets = [0, 64], sizes = [4, 32], strides = [1, 1]} : vector<4x128xf32> to vector<4x32xf32>
    %207 = math.tanh %206 : vector<4x32xf32>
    %208 = vector.extract_strided_slice %193 {offsets = [0, 96], sizes = [4, 32], strides = [1, 1]} : vector<4x128xf32> to vector<4x32xf32>
    %209 = arith.negf %208 : vector<4x32xf32>
    %210 = math.exp %209 : vector<4x32xf32>
    %cst_55 = arith.constant 1.000000e+00 : f32
    %211 = vector.broadcast %cst_55 : f32 to vector<4x32xf32>
    %212 = arith.addf %211, %210 : vector<4x32xf32>
    %213 = arith.divf %211, %212 : vector<4x32xf32>
    %214 = arith.mulf %205, %187 : vector<4x32xf32>
    %215 = arith.mulf %199, %207 : vector<4x32xf32>
    %216 = arith.addf %214, %215 : vector<4x32xf32>
    %217 = math.tanh %216 : vector<4x32xf32>
    %218 = arith.mulf %213, %217 : vector<4x32xf32>
    %219 = vector.extract_strided_slice %158 {offsets = [8, 0], sizes = [4, 128], strides = [1, 1]} : vector<32x128xf32> to vector<4x128xf32>
    %220 = arith.truncf %218 : vector<4x32xf32> to vector<4x32xbf16>
    %cst_56 = arith.constant dense<0.000000e+00> : vector<4x128xf32>
    %221 = tpu.matmul %220, %5, %cst_56 {dimension_numbers = #tpu.dot_dimension_numbers<[1], [0], [0], [1], [0, 0, 1, 1], [], []>} : vector<4x32xbf16>, vector<32x128xbf16>, vector<4x128xf32> -> vector<4x128xf32>
    %222 = arith.addf %219, %221 : vector<4x128xf32>
    %223 = vector.extract_strided_slice %222 {offsets = [0, 0], sizes = [4, 32], strides = [1, 1]} : vector<4x128xf32> to vector<4x32xf32>
    %224 = arith.negf %223 : vector<4x32xf32>
    %225 = math.exp %224 : vector<4x32xf32>
    %cst_57 = arith.constant 1.000000e+00 : f32
    %226 = vector.broadcast %cst_57 : f32 to vector<4x32xf32>
    %227 = arith.addf %226, %225 : vector<4x32xf32>
    %228 = arith.divf %226, %227 : vector<4x32xf32>
    %229 = vector.extract_strided_slice %222 {offsets = [0, 32], sizes = [4, 32], strides = [1, 1]} : vector<4x128xf32> to vector<4x32xf32>
    %230 = arith.negf %229 : vector<4x32xf32>
    %231 = math.exp %230 : vector<4x32xf32>
    %cst_58 = arith.constant 1.000000e+00 : f32
    %232 = vector.broadcast %cst_58 : f32 to vector<4x32xf32>
    %233 = arith.addf %232, %231 : vector<4x32xf32>
    %234 = arith.divf %232, %233 : vector<4x32xf32>
    %235 = vector.extract_strided_slice %222 {offsets = [0, 64], sizes = [4, 32], strides = [1, 1]} : vector<4x128xf32> to vector<4x32xf32>
    %236 = math.tanh %235 : vector<4x32xf32>
    %237 = vector.extract_strided_slice %222 {offsets = [0, 96], sizes = [4, 32], strides = [1, 1]} : vector<4x128xf32> to vector<4x32xf32>
    %238 = arith.negf %237 : vector<4x32xf32>
    %239 = math.exp %238 : vector<4x32xf32>
    %cst_59 = arith.constant 1.000000e+00 : f32
    %240 = vector.broadcast %cst_59 : f32 to vector<4x32xf32>
    %241 = arith.addf %240, %239 : vector<4x32xf32>
    %242 = arith.divf %240, %241 : vector<4x32xf32>
    %243 = arith.mulf %234, %216 : vector<4x32xf32>
    %244 = arith.mulf %228, %236 : vector<4x32xf32>
    %245 = arith.addf %243, %244 : vector<4x32xf32>
    %246 = math.tanh %245 : vector<4x32xf32>
    %247 = arith.mulf %242, %246 : vector<4x32xf32>
    %248 = vector.extract_strided_slice %158 {offsets = [12, 0], sizes = [4, 128], strides = [1, 1]} : vector<32x128xf32> to vector<4x128xf32>
    %249 = arith.truncf %247 : vector<4x32xf32> to vector<4x32xbf16>
    %cst_60 = arith.constant dense<0.000000e+00> : vector<4x128xf32>
    %250 = tpu.matmul %249, %5, %cst_60 {dimension_numbers = #tpu.dot_dimension_numbers<[1], [0], [0], [1], [0, 0, 1, 1], [], []>} : vector<4x32xbf16>, vector<32x128xbf16>, vector<4x128xf32> -> vector<4x128xf32>
    %251 = arith.addf %248, %250 : vector<4x128xf32>
    %252 = vector.extract_strided_slice %251 {offsets = [0, 0], sizes = [4, 32], strides = [1, 1]} : vector<4x128xf32> to vector<4x32xf32>
    %253 = arith.negf %252 : vector<4x32xf32>
    %254 = math.exp %253 : vector<4x32xf32>
    %cst_61 = arith.constant 1.000000e+00 : f32
    %255 = vector.broadcast %cst_61 : f32 to vector<4x32xf32>
    %256 = arith.addf %255, %254 : vector<4x32xf32>
    %257 = arith.divf %255, %256 : vector<4x32xf32>
    %258 = vector.extract_strided_slice %251 {offsets = [0, 32], sizes = [4, 32], strides = [1, 1]} : vector<4x128xf32> to vector<4x32xf32>
    %259 = arith.negf %258 : vector<4x32xf32>
    %260 = math.exp %259 : vector<4x32xf32>
    %cst_62 = arith.constant 1.000000e+00 : f32
    %261 = vector.broadcast %cst_62 : f32 to vector<4x32xf32>
    %262 = arith.addf %261, %260 : vector<4x32xf32>
    %263 = arith.divf %261, %262 : vector<4x32xf32>
    %264 = vector.extract_strided_slice %251 {offsets = [0, 64], sizes = [4, 32], strides = [1, 1]} : vector<4x128xf32> to vector<4x32xf32>
    %265 = math.tanh %264 : vector<4x32xf32>
    %266 = vector.extract_strided_slice %251 {offsets = [0, 96], sizes = [4, 32], strides = [1, 1]} : vector<4x128xf32> to vector<4x32xf32>
    %267 = arith.negf %266 : vector<4x32xf32>
    %268 = math.exp %267 : vector<4x32xf32>
    %cst_63 = arith.constant 1.000000e+00 : f32
    %269 = vector.broadcast %cst_63 : f32 to vector<4x32xf32>
    %270 = arith.addf %269, %268 : vector<4x32xf32>
    %271 = arith.divf %269, %270 : vector<4x32xf32>
    %272 = arith.mulf %263, %245 : vector<4x32xf32>
    %273 = arith.mulf %257, %265 : vector<4x32xf32>
    %274 = arith.addf %272, %273 : vector<4x32xf32>
    %275 = math.tanh %274 : vector<4x32xf32>
    %276 = arith.mulf %271, %275 : vector<4x32xf32>
    %277 = vector.extract_strided_slice %158 {offsets = [16, 0], sizes = [4, 128], strides = [1, 1]} : vector<32x128xf32> to vector<4x128xf32>
    %278 = arith.truncf %276 : vector<4x32xf32> to vector<4x32xbf16>
    %cst_64 = arith.constant dense<0.000000e+00> : vector<4x128xf32>
    %279 = tpu.matmul %278, %5, %cst_64 {dimension_numbers = #tpu.dot_dimension_numbers<[1], [0], [0], [1], [0, 0, 1, 1], [], []>} : vector<4x32xbf16>, vector<32x128xbf16>, vector<4x128xf32> -> vector<4x128xf32>
    %280 = arith.addf %277, %279 : vector<4x128xf32>
    %281 = vector.extract_strided_slice %280 {offsets = [0, 0], sizes = [4, 32], strides = [1, 1]} : vector<4x128xf32> to vector<4x32xf32>
    %282 = arith.negf %281 : vector<4x32xf32>
    %283 = math.exp %282 : vector<4x32xf32>
    %cst_65 = arith.constant 1.000000e+00 : f32
    %284 = vector.broadcast %cst_65 : f32 to vector<4x32xf32>
    %285 = arith.addf %284, %283 : vector<4x32xf32>
    %286 = arith.divf %284, %285 : vector<4x32xf32>
    %287 = vector.extract_strided_slice %280 {offsets = [0, 32], sizes = [4, 32], strides = [1, 1]} : vector<4x128xf32> to vector<4x32xf32>
    %288 = arith.negf %287 : vector<4x32xf32>
    %289 = math.exp %288 : vector<4x32xf32>
    %cst_66 = arith.constant 1.000000e+00 : f32
    %290 = vector.broadcast %cst_66 : f32 to vector<4x32xf32>
    %291 = arith.addf %290, %289 : vector<4x32xf32>
    %292 = arith.divf %290, %291 : vector<4x32xf32>
    %293 = vector.extract_strided_slice %280 {offsets = [0, 64], sizes = [4, 32], strides = [1, 1]} : vector<4x128xf32> to vector<4x32xf32>
    %294 = math.tanh %293 : vector<4x32xf32>
    %295 = vector.extract_strided_slice %280 {offsets = [0, 96], sizes = [4, 32], strides = [1, 1]} : vector<4x128xf32> to vector<4x32xf32>
    %296 = arith.negf %295 : vector<4x32xf32>
    %297 = math.exp %296 : vector<4x32xf32>
    %cst_67 = arith.constant 1.000000e+00 : f32
    %298 = vector.broadcast %cst_67 : f32 to vector<4x32xf32>
    %299 = arith.addf %298, %297 : vector<4x32xf32>
    %300 = arith.divf %298, %299 : vector<4x32xf32>
    %301 = arith.mulf %292, %274 : vector<4x32xf32>
    %302 = arith.mulf %286, %294 : vector<4x32xf32>
    %303 = arith.addf %301, %302 : vector<4x32xf32>
    %304 = math.tanh %303 : vector<4x32xf32>
    %305 = arith.mulf %300, %304 : vector<4x32xf32>
    %306 = vector.extract_strided_slice %158 {offsets = [20, 0], sizes = [4, 128], strides = [1, 1]} : vector<32x128xf32> to vector<4x128xf32>
    %307 = arith.truncf %305 : vector<4x32xf32> to vector<4x32xbf16>
    %cst_68 = arith.constant dense<0.000000e+00> : vector<4x128xf32>
    %308 = tpu.matmul %307, %5, %cst_68 {dimension_numbers = #tpu.dot_dimension_numbers<[1], [0], [0], [1], [0, 0, 1, 1], [], []>} : vector<4x32xbf16>, vector<32x128xbf16>, vector<4x128xf32> -> vector<4x128xf32>
    %309 = arith.addf %306, %308 : vector<4x128xf32>
    %310 = vector.extract_strided_slice %309 {offsets = [0, 0], sizes = [4, 32], strides = [1, 1]} : vector<4x128xf32> to vector<4x32xf32>
    %311 = arith.negf %310 : vector<4x32xf32>
    %312 = math.exp %311 : vector<4x32xf32>
    %cst_69 = arith.constant 1.000000e+00 : f32
    %313 = vector.broadcast %cst_69 : f32 to vector<4x32xf32>
    %314 = arith.addf %313, %312 : vector<4x32xf32>
    %315 = arith.divf %313, %314 : vector<4x32xf32>
    %316 = vector.extract_strided_slice %309 {offsets = [0, 32], sizes = [4, 32], strides = [1, 1]} : vector<4x128xf32> to vector<4x32xf32>
    %317 = arith.negf %316 : vector<4x32xf32>
    %318 = math.exp %317 : vector<4x32xf32>
    %cst_70 = arith.constant 1.000000e+00 : f32
    %319 = vector.broadcast %cst_70 : f32 to vector<4x32xf32>
    %320 = arith.addf %319, %318 : vector<4x32xf32>
    %321 = arith.divf %319, %320 : vector<4x32xf32>
    %322 = vector.extract_strided_slice %309 {offsets = [0, 64], sizes = [4, 32], strides = [1, 1]} : vector<4x128xf32> to vector<4x32xf32>
    %323 = math.tanh %322 : vector<4x32xf32>
    %324 = vector.extract_strided_slice %309 {offsets = [0, 96], sizes = [4, 32], strides = [1, 1]} : vector<4x128xf32> to vector<4x32xf32>
    %325 = arith.negf %324 : vector<4x32xf32>
    %326 = math.exp %325 : vector<4x32xf32>
    %cst_71 = arith.constant 1.000000e+00 : f32
    %327 = vector.broadcast %cst_71 : f32 to vector<4x32xf32>
    %328 = arith.addf %327, %326 : vector<4x32xf32>
    %329 = arith.divf %327, %328 : vector<4x32xf32>
    %330 = arith.mulf %321, %303 : vector<4x32xf32>
    %331 = arith.mulf %315, %323 : vector<4x32xf32>
    %332 = arith.addf %330, %331 : vector<4x32xf32>
    %333 = math.tanh %332 : vector<4x32xf32>
    %334 = arith.mulf %329, %333 : vector<4x32xf32>
    %335 = vector.extract_strided_slice %158 {offsets = [24, 0], sizes = [4, 128], strides = [1, 1]} : vector<32x128xf32> to vector<4x128xf32>
    %336 = arith.truncf %334 : vector<4x32xf32> to vector<4x32xbf16>
    %cst_72 = arith.constant dense<0.000000e+00> : vector<4x128xf32>
    %337 = tpu.matmul %336, %5, %cst_72 {dimension_numbers = #tpu.dot_dimension_numbers<[1], [0], [0], [1], [0, 0, 1, 1], [], []>} : vector<4x32xbf16>, vector<32x128xbf16>, vector<4x128xf32> -> vector<4x128xf32>
    %338 = arith.addf %335, %337 : vector<4x128xf32>
    %339 = vector.extract_strided_slice %338 {offsets = [0, 0], sizes = [4, 32], strides = [1, 1]} : vector<4x128xf32> to vector<4x32xf32>
    %340 = arith.negf %339 : vector<4x32xf32>
    %341 = math.exp %340 : vector<4x32xf32>
    %cst_73 = arith.constant 1.000000e+00 : f32
    %342 = vector.broadcast %cst_73 : f32 to vector<4x32xf32>
    %343 = arith.addf %342, %341 : vector<4x32xf32>
    %344 = arith.divf %342, %343 : vector<4x32xf32>
    %345 = vector.extract_strided_slice %338 {offsets = [0, 32], sizes = [4, 32], strides = [1, 1]} : vector<4x128xf32> to vector<4x32xf32>
    %346 = arith.negf %345 : vector<4x32xf32>
    %347 = math.exp %346 : vector<4x32xf32>
    %cst_74 = arith.constant 1.000000e+00 : f32
    %348 = vector.broadcast %cst_74 : f32 to vector<4x32xf32>
    %349 = arith.addf %348, %347 : vector<4x32xf32>
    %350 = arith.divf %348, %349 : vector<4x32xf32>
    %351 = vector.extract_strided_slice %338 {offsets = [0, 64], sizes = [4, 32], strides = [1, 1]} : vector<4x128xf32> to vector<4x32xf32>
    %352 = math.tanh %351 : vector<4x32xf32>
    %353 = vector.extract_strided_slice %338 {offsets = [0, 96], sizes = [4, 32], strides = [1, 1]} : vector<4x128xf32> to vector<4x32xf32>
    %354 = arith.negf %353 : vector<4x32xf32>
    %355 = math.exp %354 : vector<4x32xf32>
    %cst_75 = arith.constant 1.000000e+00 : f32
    %356 = vector.broadcast %cst_75 : f32 to vector<4x32xf32>
    %357 = arith.addf %356, %355 : vector<4x32xf32>
    %358 = arith.divf %356, %357 : vector<4x32xf32>
    %359 = arith.mulf %350, %332 : vector<4x32xf32>
    %360 = arith.mulf %344, %352 : vector<4x32xf32>
    %361 = arith.addf %359, %360 : vector<4x32xf32>
    %362 = math.tanh %361 : vector<4x32xf32>
    %363 = arith.mulf %358, %362 : vector<4x32xf32>
    %364 = vector.extract_strided_slice %158 {offsets = [28, 0], sizes = [4, 128], strides = [1, 1]} : vector<32x128xf32> to vector<4x128xf32>
    %365 = arith.truncf %363 : vector<4x32xf32> to vector<4x32xbf16>
    %cst_76 = arith.constant dense<0.000000e+00> : vector<4x128xf32>
    %366 = tpu.matmul %365, %5, %cst_76 {dimension_numbers = #tpu.dot_dimension_numbers<[1], [0], [0], [1], [0, 0, 1, 1], [], []>} : vector<4x32xbf16>, vector<32x128xbf16>, vector<4x128xf32> -> vector<4x128xf32>
    %367 = arith.addf %364, %366 : vector<4x128xf32>
    %368 = vector.extract_strided_slice %367 {offsets = [0, 0], sizes = [4, 32], strides = [1, 1]} : vector<4x128xf32> to vector<4x32xf32>
    %369 = arith.negf %368 : vector<4x32xf32>
    %370 = math.exp %369 : vector<4x32xf32>
    %cst_77 = arith.constant 1.000000e+00 : f32
    %371 = vector.broadcast %cst_77 : f32 to vector<4x32xf32>
    %372 = arith.addf %371, %370 : vector<4x32xf32>
    %373 = arith.divf %371, %372 : vector<4x32xf32>
    %374 = vector.extract_strided_slice %367 {offsets = [0, 32], sizes = [4, 32], strides = [1, 1]} : vector<4x128xf32> to vector<4x32xf32>
    %375 = arith.negf %374 : vector<4x32xf32>
    %376 = math.exp %375 : vector<4x32xf32>
    %cst_78 = arith.constant 1.000000e+00 : f32
    %377 = vector.broadcast %cst_78 : f32 to vector<4x32xf32>
    %378 = arith.addf %377, %376 : vector<4x32xf32>
    %379 = arith.divf %377, %378 : vector<4x32xf32>
    %380 = vector.extract_strided_slice %367 {offsets = [0, 64], sizes = [4, 32], strides = [1, 1]} : vector<4x128xf32> to vector<4x32xf32>
    %381 = math.tanh %380 : vector<4x32xf32>
    %382 = vector.extract_strided_slice %367 {offsets = [0, 96], sizes = [4, 32], strides = [1, 1]} : vector<4x128xf32> to vector<4x32xf32>
    %383 = arith.negf %382 : vector<4x32xf32>
    %384 = math.exp %383 : vector<4x32xf32>
    %cst_79 = arith.constant 1.000000e+00 : f32
    %385 = vector.broadcast %cst_79 : f32 to vector<4x32xf32>
    %386 = arith.addf %385, %384 : vector<4x32xf32>
    %387 = arith.divf %385, %386 : vector<4x32xf32>
    %388 = arith.mulf %379, %361 : vector<4x32xf32>
    %389 = arith.mulf %373, %381 : vector<4x32xf32>
    %390 = arith.addf %388, %389 : vector<4x32xf32>
    %391 = math.tanh %390 : vector<4x32xf32>
    %392 = arith.mulf %387, %391 : vector<4x32xf32>
    %393 = vector.shape_cast %189 : vector<4x32xf32> to vector<1x4x32xf32>
    %394 = vector.shape_cast %218 : vector<4x32xf32> to vector<1x4x32xf32>
    %395 = vector.shape_cast %247 : vector<4x32xf32> to vector<1x4x32xf32>
    %396 = vector.shape_cast %276 : vector<4x32xf32> to vector<1x4x32xf32>
    %397 = vector.shape_cast %305 : vector<4x32xf32> to vector<1x4x32xf32>
    %398 = vector.shape_cast %334 : vector<4x32xf32> to vector<1x4x32xf32>
    %399 = vector.shape_cast %363 : vector<4x32xf32> to vector<1x4x32xf32>
    %400 = vector.shape_cast %392 : vector<4x32xf32> to vector<1x4x32xf32>
    %401 = tpu.concatenate %393, %394, %395, %396, %397, %398, %399, %400 in 0 : vector<1x4x32xf32>, vector<1x4x32xf32>, vector<1x4x32xf32>, vector<1x4x32xf32>, vector<1x4x32xf32>, vector<1x4x32xf32>, vector<1x4x32xf32>, vector<1x4x32xf32> -> vector<8x4x32xf32>
    %402 = vector.shape_cast %401 : vector<8x4x32xf32> to vector<32x32xf32>
    %403 = arith.truncf %402 : vector<32x32xf32> to vector<32x32xbf16>
    %cst_80 = arith.constant dense<0.000000e+00> : vector<32x32xf32>
    %404 = tpu.matmul %403, %7, %cst_80 {dimension_numbers = #tpu.dot_dimension_numbers<[1], [0], [0], [1], [0, 0, 1, 1], [], []>} : vector<32x32xbf16>, vector<32x32xbf16>, vector<32x32xf32> -> vector<32x32xf32>
    %405 = vector.broadcast %15 : vector<1x32xf32> to vector<32x32xf32>
    %406 = arith.addf %404, %405 : vector<32x32xf32>
    %407 = math.tanh %406 : vector<32x32xf32>
    %408 = vector.shape_cast %407 : vector<32x32xf32> to vector<8x4x32xf32>
    %409 = vector.shape_cast %16 : vector<1x32xf32> to vector<1x1x32xf32>
    %410 = vector.broadcast %409 : vector<1x1x32xf32> to vector<8x4x32xf32>
    %411 = arith.mulf %408, %410 : vector<8x4x32xf32>
    %cst_81 = arith.constant dense<0.000000e+00> : vector<8x4xf32>
    %412 = vector.multi_reduction <add>, %411, %cst_81 [2] : vector<8x4x32xf32> to vector<8x4xf32>
    %413 = vector.shape_cast %412 : vector<8x4xf32> to vector<8x4x1xf32>
    %414 = vector.shape_cast %17 : vector<1x1xf32> to vector<1x1x1xf32>
    %415 = vector.broadcast %414 : vector<1x1x1xf32> to vector<8x4x1xf32>
    %416 = arith.addf %413, %415 : vector<8x4x1xf32>
    %c32_82 = arith.constant 32 : index
    %c0_83 = arith.constant 0 : index
    %417 = vector.load %arg1[%c32_82, %c0_83] : memref<36x1xi32, #tpu.memory_space<vmem>>, vector<4x1xi32>
    %418 = tpu.iota {dimensions = array<i32: 0>} : vector<8x4x1xi32>
    %419 = vector.shape_cast %417 : vector<4x1xi32> to vector<1x4x1xi32>
    %420 = vector.broadcast %419 : vector<1x4x1xi32> to vector<8x4x1xi32>
    %421 = arith.cmpi slt, %418, %420 : vector<8x4x1xi32>
    %422 = arith.extui %421 : vector<8x4x1xi1> to vector<8x4x1xi32>
    %423 = arith.sitofp %422 : vector<8x4x1xi32> to vector<8x4x1xf32>
    %cst_84 = arith.constant -1.000000e+30 : f32
    %424 = vector.broadcast %cst_84 : f32 to vector<8x4x1xf32>
    %425 = arith.select %421, %416, %424 : vector<8x4x1xi1>, vector<8x4x1xf32>
    %cst_85 = arith.constant dense<0xFF800000> : vector<4x1xf32>
    %426 = vector.multi_reduction <maximumf>, %425, %cst_85 [0] : vector<8x4x1xf32> to vector<4x1xf32>
    %427 = vector.shape_cast %426 : vector<4x1xf32> to vector<1x4x1xf32>
    %428 = vector.broadcast %427 : vector<1x4x1xf32> to vector<8x4x1xf32>
    %429 = arith.subf %425, %428 : vector<8x4x1xf32>
    %430 = math.exp %429 : vector<8x4x1xf32>
    %431 = arith.mulf %430, %423 : vector<8x4x1xf32>
    %cst_86 = arith.constant dense<0.000000e+00> : vector<4x1xf32>
    %432 = vector.multi_reduction <add>, %431, %cst_86 [0] : vector<8x4x1xf32> to vector<4x1xf32>
    %433 = vector.shape_cast %432 : vector<4x1xf32> to vector<1x4x1xf32>
    %434 = tpu.reciprocal %433 {approx = true} : vector<1x4x1xf32> -> vector<1x4x1xf32>
    %435 = vector.broadcast %434 : vector<1x4x1xf32> to vector<8x4x1xf32>
    %436 = arith.mulf %431, %435 : vector<8x4x1xf32>
    %437 = vector.broadcast %436 : vector<8x4x1xf32> to vector<8x4x32xf32>
    %438 = arith.mulf %437, %401 : vector<8x4x32xf32>
    %cst_87 = arith.constant dense<0.000000e+00> : vector<4x32xf32>
    %439 = vector.multi_reduction <add>, %438, %cst_87 [0] : vector<8x4x32xf32> to vector<4x32xf32>
    %440 = math.tanh %439 : vector<4x32xf32>
    %441 = math.tanh %440 : vector<4x32xf32>
    %442 = vector.extract_strided_slice %441 {offsets = [0, 0], sizes = [2, 32], strides = [1, 1]} : vector<4x32xf32> to vector<2x32xf32>
    %443 = vector.extract_strided_slice %441 {offsets = [2, 0], sizes = [2, 32], strides = [1, 1]} : vector<4x32xf32> to vector<2x32xf32>
    %444 = arith.mulf %147, %442 : vector<2x32xf32>
    %cst_88 = arith.constant dense<0.000000e+00> : vector<2xf32>
    %445 = vector.multi_reduction <add>, %444, %cst_88 [1] : vector<2x32xf32> to vector<2xf32>
    %446 = vector.shape_cast %445 : vector<2xf32> to vector<2x1xf32>
    %447 = arith.mulf %147, %147 : vector<2x32xf32>
    %cst_89 = arith.constant dense<0.000000e+00> : vector<2xf32>
    %448 = vector.multi_reduction <add>, %447, %cst_89 [1] : vector<2x32xf32> to vector<2xf32>
    %449 = vector.shape_cast %448 : vector<2xf32> to vector<2x1xf32>
    %cst_90 = arith.constant 1.000000e-16 : f32
    %450 = vector.broadcast %cst_90 : f32 to vector<2x1xf32>
    %451 = arith.maximumf %449, %450 : vector<2x1xf32>
    %452 = arith.mulf %442, %442 : vector<2x32xf32>
    %cst_91 = arith.constant dense<0.000000e+00> : vector<2xf32>
    %453 = vector.multi_reduction <add>, %452, %cst_91 [1] : vector<2x32xf32> to vector<2xf32>
    %454 = vector.shape_cast %453 : vector<2xf32> to vector<2x1xf32>
    %cst_92 = arith.constant 1.000000e-16 : f32
    %455 = vector.broadcast %cst_92 : f32 to vector<2x1xf32>
    %456 = arith.maximumf %454, %455 : vector<2x1xf32>
    %457 = math.rsqrt %451 : vector<2x1xf32>
    %458 = arith.mulf %446, %457 : vector<2x1xf32>
    %459 = math.rsqrt %456 : vector<2x1xf32>
    %460 = arith.mulf %458, %459 : vector<2x1xf32>
    %461 = arith.mulf %147, %443 : vector<2x32xf32>
    %cst_93 = arith.constant dense<0.000000e+00> : vector<2xf32>
    %462 = vector.multi_reduction <add>, %461, %cst_93 [1] : vector<2x32xf32> to vector<2xf32>
    %463 = vector.shape_cast %462 : vector<2xf32> to vector<2x1xf32>
    %464 = arith.mulf %147, %147 : vector<2x32xf32>
    %cst_94 = arith.constant dense<0.000000e+00> : vector<2xf32>
    %465 = vector.multi_reduction <add>, %464, %cst_94 [1] : vector<2x32xf32> to vector<2xf32>
    %466 = vector.shape_cast %465 : vector<2xf32> to vector<2x1xf32>
    %cst_95 = arith.constant 1.000000e-16 : f32
    %467 = vector.broadcast %cst_95 : f32 to vector<2x1xf32>
    %468 = arith.maximumf %466, %467 : vector<2x1xf32>
    %469 = arith.mulf %443, %443 : vector<2x32xf32>
    %cst_96 = arith.constant dense<0.000000e+00> : vector<2xf32>
    %470 = vector.multi_reduction <add>, %469, %cst_96 [1] : vector<2x32xf32> to vector<2xf32>
    %471 = vector.shape_cast %470 : vector<2xf32> to vector<2x1xf32>
    %cst_97 = arith.constant 1.000000e-16 : f32
    %472 = vector.broadcast %cst_97 : f32 to vector<2x1xf32>
    %473 = arith.maximumf %471, %472 : vector<2x1xf32>
    %474 = math.rsqrt %468 : vector<2x1xf32>
    %475 = arith.mulf %463, %474 : vector<2x1xf32>
    %476 = math.rsqrt %473 : vector<2x1xf32>
    %477 = arith.mulf %475, %476 : vector<2x1xf32>
    %cst_98 = arith.constant 6.000000e-01 : f32
    %478 = vector.broadcast %cst_98 : f32 to vector<2x1xf32>
    %479 = arith.subf %478, %460 : vector<2x1xf32>
    %480 = arith.addf %479, %477 : vector<2x1xf32>
    %cst_99 = arith.constant 9.99999997E-7 : f32
    %481 = vector.broadcast %cst_99 : f32 to vector<2x1xf32>
    %482 = arith.maximumf %480, %481 : vector<2x1xf32>
    %cst_100 = arith.constant dense<0.000000e+00> : vector<1xf32>
    %483 = vector.multi_reduction <add>, %482, %cst_100 [0] : vector<2x1xf32> to vector<1xf32>
    %484 = vector.shape_cast %483 : vector<1xf32> to vector<1x1xf32>
    %cst_101 = arith.constant 5.000000e-01 : f32
    %485 = vector.broadcast %cst_101 : f32 to vector<1x1xf32>
    %486 = arith.mulf %484, %485 : vector<1x1xf32>
    %c0_102 = arith.constant 0 : index
    %c0_103 = arith.constant 0 : index
    %487 = vector.load %arg5[%c0_102, %c0_103] : memref<1x1xf32, #tpu.memory_space<vmem>>, vector<1x1xf32>
    tpu.vector_store %arg5[%c0_102, %c0_103], %486 {strides = array<i32>} : memref<1x1xf32, #tpu.memory_space<vmem>>, vector<1x1xf32>,
    return
  }
}

</mosaic_0001>

<bundles_post_ra>
// kernel: cfg_embeder_forward.1
= control target key start
LH: loop header
LB: loop body
LE: loop exit
PB: predicated region body
PF: predicated region fallthrough
CT: control target
= control target key end

     0   :  { %v2383_v2 = vmov 0   ;;  %vm108_vm0 = vcmask 261120   ;;  %s2953_s0 = inlined_call_operand.vmem [shape: f32[16,144], index: 0, kind: input, shape index: {}]   ;;  %s2954_s1 = inlined_call_operand.vmem [shape: s32[36,1], index: 1, kind: input, shape index: {}]   ;;  %s2955_s2 = inlined_call_operand.vmem [shape: bf16[32,640], index: 2, kind: input, shape index: {}]   ;;  %s2956_s3 = inlined_call_operand.vmem [shape: bf16[64,128], index: 3, kind: input, shape index: {}]   ;;  %s2957_s4 = inlined_call_operand.vmem [shape: f32[1,1408], index: 4, kind: input, shape index: {}]   ;;  %s2958_s5 = inlined_call_operand.hbm [shape: f32[1,1], index: 5, kind: output, shape index: {}]  }
   0x1   :  { %v2165_v0 = vld [vmem:[%s2955_s2 + $0x4] ss:$20 sps:$4 sm:$0xff]   ;;  %v2426_v1 = vld [vmem:[%s2955_s2] ss:$20 sps:$4 sm:$0xff]   ;;  %144 = vmatprep.mubr.bf16.mxu0 %v2383_v2  ;;  %2163 = vset.pattern.permute.xlu1 %v2383_v2  ;;  %v2438_v4 = vld [vmem:[%s2955_s2 + $0x28] ss:$20 sps:$4 sm:$0xff]  }
   0x2   :  { %112 = vmatprep.subr.bf16.mxu0 %v2165_v0  ;;  %v2433_v3 = vld [vmem:[%s2955_s2 + $0x2c] ss:$20 sps:$4 sm:$0xff]   ;;  %2164 = vset.pattern.permute.xlu0 %v2383_v2  ;;  %v2450_v6 = vld [vmem:[%s2953_s0 + $0x10] sm:$0xff] }
   0x3   :  { %113 = vmatpush1.bf16.msra.mxu0 %v2426_v1  ;;  %v2445_v5 = vld [vmem:[%s2953_s0] sm:$0xff] }
   0x4   :  { %114 = vmatprep.subr.bf16.mxu0 %v2433_v3  ;;  %v87_v7 = vpack.c.bf16 %v2450_v6, %v2445_v5 }
   0x7   :  { %115 = vmatpush1.bf16.msra.mxu0 %v2438_v4 }
   0xa   :  { %1934 = vmatmul.mubr.msk.bf16.vlgmr.msra.gmra.mrb[0].mxu0 %vm108_vm0, %v87_v7 }
   0xb   :  { %10 = vsyncpa [#allocation3], 0  ;;  %v2384_v8 = vmov 0.0   ;;  %v24_v9 = vld [vmem:[%s2953_s0 + $0x8] sm:$0xff]  ;;  %v25_v10 = vld [vmem:[%s2953_s0 + $0x18] sm:$0xff]  ;;  %vm2385_vm1 = vmmov 0   ;;  %v54_v14 = vlaneseq }
   0xc   :  { %2046 = vmatprep.subr.bf16.mxu1 %v2384_v8  ;;  %2052 = vmatprep.subr.bf16.mxu0 %v2384_v8  ;;  %v2465_v11 = vpack.c.bf16 %v25_v10, %v24_v9  ;;  %vm64_vm2 = vcmask 130048   ;;  %v43_v17 = vld [vmem:[%s2957_s4] sm:$0x3]  ;;  %s2386_s11 = smov 32   ;;  %v1928_v31 = vld [vmem:[%s2957_s4 + $0x2] ss:$0 sm:$0xff] }
   0xd   :  { %2048 = vmatprep.mubr.msk.bf16.mxu1 %vm2385_vm1, %v2384_v8  ;;  %2054 = vmatprep.mubr.msk.bf16.mxu0 %vm2385_vm1, %v2384_v8  ;;  %v65_v12 = vsel %vm64_vm2, %v24_v9, 0.0  ;;  %v68_v13 = vsel %vm64_vm2, %v25_v10, 0.0  ;;  %v55_v15 = vshrl.u32 %v54_v14, 7  ;;  %v1929_v34 = vld [vmem:[%s2957_s4 + $0x3] ss:$0 sm:$0xff]  ;;  %s2387_s16 = smov 64  }
   0xe   :  { %66 = vadd.xlane.f32.xlu0 %v65_v12  ;;  %vm807_vm5 = vcmask 523264   ;;  %vm1618_vm8 = vcmask 257024   ;;  %s2388_s6 = smov 96   ;;  %vm1690_vm14 = vcmask 3072  }
   0xf   :  { %v60_v16 = vsub.s32 1, %v55_v15  ;;  %v56_v18 = vsub.s32 0, %v55_v15 }
  0x11   :  { %v2477_v19 = vrot.slane %v43_v17, %v60_v16  ;;  %v2479_v20 = vrot.slane %v43_v17, %v56_v18 }
  0x12   :  { %69 = vadd.xlane.f32.xlu0 %v68_v13 }
  0x9b   :  { %v67_v30 = vpop.xlane.xlu0 %66 }
  0x9c   :  { %v77_v33 = vmul.f32 %v1928_v31, %v67_v30 }
  0x9e   :  { %v2499_v36 = vadd.f32 %v1929_v34, %v77_v33 }
  0x9f   :  { %v70_v32 = vpop.xlane.xlu0 %69 }
  0xa0   :  { %v78_v35 = vmul.f32 %v1928_v31, %v70_v32 }
  0xa2   :  { %v2501_v38 = vadd.f32 %v1929_v34, %v78_v35 }
  0xdd   :  { %v146_v21 = vpop.f32.mrb[0].mxu0 }
  0xde   :  { %v148_v22 = vpop.f32.mrb[1].mxu0  ;;  %v147_v25 = vadd.f32 %v146_v21, %v2479_v20 }
  0xdf   :  { %v149_v23 = vadd.f32 %v148_v22, %v2477_v19  ;;  %v150_v24 = vpop.f32.mrb[2].mxu0 }
  0xe0   :  { %v151_v26 = vadd.f32 %v150_v24, %v2479_v20  ;;  %v152_v27 = vpop.f32.mrb[3].mxu0 }
  0xe1   :  { %224 = vrot.lane.b32.xlu1 %v149_v23, %s2386_s11  ;;  %v153_v29 = vadd.f32 %v152_v27, %v2477_v19 }
  0xe2   :  { %v155_v28 = vpack.c.bf16 %v151_v26, %v147_v25 }
  0xe4   :  { %2047 = vmatpush3.bf16.msra.mxu1 %v155_v28 }
  0xe5   :  { %226 = vrot.lane.b32.xlu1 %v153_v29, %s2386_s11  ;;  %278 = vmatprep.subr.bf16.mxu1 %v2165_v0 }
  0xe7   :  { %2049 = vmatmul.mubr.msk.bf16.vlgmr.msra.gmra.mrb[0].mxu1 %vm64_vm2, %v2465_v11 }
  0xe8   :  { %279 = vmatpush1.bf16.msra.mxu1 %v2426_v1  ;;  %310 = vmatprep.mubr.bf16.mxu1 %v2383_v2 }
  0xe9   :  { %280 = vmatprep.subr.bf16.mxu1 %v2433_v3 }
  0xec   :  { %281 = vmatpush1.bf16.msra.mxu1 %v2438_v4 }
  0xed   :  { %441 = vmatprep.subr.bf16.mxu1 %v2165_v0 }
 0x153   :  { %v225_v37 = vpop.permute.xlu1 %224 }
 0x157   :  { %v227_v46 = vpop.permute.xlu1 %226 }
 0x1ba   :  { %v193_v39 = vpop.f32.mrb[0].mxu1 }
 0x1bb   :  { %v194_v40 = vadd.f32 %v193_v39, %v2499_v36  ;;  %v2050_v41 = vpop.f32.mrb[1].mxu1 }
 0x1bc   :  { %v196_v42 = vpop.f32.mrb[2].mxu1 }
 0x1bd   :  { %v230_v43 = vadd.f32 %v225_v37, %v194_v40  ;;  %v197_v44 = vadd.f32 %v196_v42, %v2501_v38  ;;  %v2051_v45 = vpop.f32.mrb[3].mxu1 }
 0x1bf   :  { %v1938_v47 = vmul.f32 -1.442695, %v230_v43  ;;  %v231_v48 = vadd.f32 %v227_v46, %v197_v44 }
 0x1c1   :  { %2181 = vpow2.f32 %v1938_v47  ;;  %v1939_v49 = vmul.f32 -1.442695, %v231_v48 }
 0x1c3   :  { %2183 = vpow2.f32 %v1939_v49 }
 0x1cb   :  { %v2182_v50 = vpop.eup %2181 }
 0x1cc   :  { %v238_v51 = vadd.f32 1.0, %v2182_v50 }
 0x1cd   :  { %v2184_v52 = vpop.eup %2183 }
 0x1ce   :  { %2185 = vrcp.f32 %v238_v51  ;;  %v239_v53 = vadd.f32 1.0, %v2184_v52 }
 0x1d0   :  { %2187 = vrcp.f32 %v239_v53 }
 0x1d8   :  { %v2186_v54 = vpop.eup %2185 }
 0x1d9   :  { %v244_v55 = vmul.f32 %v2186_v54, %v149_v23 }
 0x1da   :  { %v2188_v56 = vpop.eup %2187 }
 0x1db   :  { %248 = vrot.lane.b32.xlu0 %v244_v55, %s2386_s11  ;;  %v245_v57 = vmul.f32 %v2188_v56, %v153_v29 }
 0x1dd   :  { %250 = vrot.lane.b32.xlu1 %v245_v57, %s2386_s11 }
 0x1e1   :  { %202 = vrot.lane.b32.xlu1 %v147_v25, %s2386_s11 }
 0x1e5   :  { %204 = vrot.lane.b32.xlu1 %v151_v26, %s2386_s11 }
 0x24d   :  { %v249_v58 = vpop.permute.xlu0 %248 }
 0x24e   :  { %v254_v59 = vadd.f32 %v249_v58, %v194_v40 }
 0x24f   :  { %v251_v60 = vpop.permute.xlu1 %250 }
 0x250   :  { %2189 = vtanh.f32 %v254_v59  ;;  %v255_v61 = vadd.f32 %v251_v60, %v197_v44 }
 0x252   :  { %2191 = vtanh.f32 %v255_v61 }
 0x253   :  { %v203_v0 = vpop.permute.xlu1 %202 }
 0x254   :  { %v208_v9 = vadd.f32 %v203_v0, %v194_v40 }
 0x256   :  { %v1936_v12 = vmul.f32 -1.442695, %v208_v9 }
 0x257   :  { %v205_v7 = vpop.permute.xlu1 %204 }
 0x258   :  { %v209_v10 = vadd.f32 %v205_v7, %v197_v44  ;;  %2193 = vpow2.f32 %v1936_v12 }
 0x25a   :  { %v2190_v62 = vpop.eup %2189  ;;  %v1937_v13 = vmul.f32 -1.442695, %v209_v10 }
 0x25b   :  { %264 = vrot.lane.b32.xlu1 %v2190_v62, %s2387_s16 }
 0x25c   :  { %v2192_v63 = vpop.eup %2191  ;;  %2195 = vpow2.f32 %v1937_v13 }
 0x25f   :  { %266 = vrot.lane.b32.xlu1 %v2192_v63, %s2387_s16 }
 0x262   :  { %v2194_v15 = vpop.eup %2193 }
 0x263   :  { %v216_v17 = vadd.f32 1.0, %v2194_v15 }
 0x265   :  { %2197 = vrcp.f32 %v216_v17 }
 0x266   :  { %v2196_v16 = vpop.eup %2195 }
 0x267   :  { %v217_v18 = vadd.f32 1.0, %v2196_v16 }
 0x269   :  { %2199 = vrcp.f32 %v217_v18 }
 0x26f   :  { %v2198_v21 = vpop.eup %2197 }
 0x270   :  { %v258_v24 = vsub.f32 1.0, %v2198_v21 }
 0x272   :  { %v260_v28 = vmul.f32 %v258_v24, %v2445_v5 }
 0x273   :  { %v2200_v22 = vpop.eup %2199 }
 0x274   :  { %v259_v25 = vsub.f32 1.0, %v2200_v22 }
 0x276   :  { %v261_v29 = vmul.f32 %v259_v25, %v2450_v6 }
 0x2cd   :  { %v265_v23 = vpop.permute.xlu1 %264 }
 0x2ce   :  { %v270_v26 = vmul.f32 %v2198_v21, %v265_v23 }
 0x2d0   :  { %v2513_v31 = vadd.f32 %v270_v26, %v260_v28 }
 0x2d1   :  { %v267_v27 = vpop.permute.xlu1 %266 }
 0x2d2   :  { %v271_v30 = vmul.f32 %v2200_v22, %v267_v27 }
 0x2d4   :  { %v2515_v32 = vadd.f32 %v271_v30, %v261_v29 }
 0x2d6   :  { %v274_v33 = vpack.c.bf16 %v2515_v32, %v2513_v31 }
 0x2d8   :  { %1940 = vmatmul.mubr.msk.bf16.vlgmr.msra.gmra.mrb[4].mxu1 %vm108_vm0, %v274_v33 }
 0x2d9   :  { %442 = vmatpush1.bf16.msra.mxu1 %v2426_v1  ;;  %473 = vmatprep.mubr.bf16.mxu1 %v2383_v2 }
 0x2da   :  { %443 = vmatprep.subr.bf16.mxu1 %v2433_v3 }
 0x2dd   :  { %444 = vmatpush1.bf16.msra.mxu1 %v2438_v4 }
 0x2de   :  { %2064 = vmatprep.subr.bf16.mxu1 %v2384_v8 }
 0x3ab   :  { %v312_v5 = vpop.f32.mrb[4].mxu1 }
 0x3ac   :  { %v314_v6 = vpop.f32.mrb[5].mxu1  ;;  %v313_v37 = vadd.f32 %v312_v5, %v2479_v20 }
 0x3ad   :  { %v315_v34 = vadd.f32 %v314_v6, %v2477_v19  ;;  %v316_v35 = vpop.f32.mrb[6].mxu1 }
 0x3ae   :  { %v317_v39 = vadd.f32 %v316_v35, %v2479_v20  ;;  %v318_v40 = vpop.f32.mrb[7].mxu1 }
 0x3af   :  { %v319_v1 = vadd.f32 %v318_v40, %v2477_v19  ;;  %387 = vrot.lane.b32.xlu1 %v315_v34, %s2386_s11 }
 0x3b0   :  { %v321_v41 = vpack.c.bf16 %v317_v39, %v313_v37 }
 0x3b1   :  { %389 = vrot.lane.b32.xlu0 %v319_v1, %s2386_s11 }
 0x3b2   :  { %2053 = vmatpush3.bf16.msra.mxu0 %v321_v41 }
 0x3b3   :  { %2058 = vmatprep.subr.bf16.mxu0 %v2384_v8 }
 0x3b5   :  { %2055 = vmatmul.mubr.msk.bf16.vlgmr.msra.gmra.mrb[4].mxu0 %vm64_vm2, %v2465_v11 }
 0x3b6   :  { %2060 = vmatprep.mubr.msk.bf16.mxu0 %vm2385_vm1, %v2384_v8 }
 0x421   :  { %v388_v43 = vpop.permute.xlu1 %387 }
 0x423   :  { %v390_v48 = vpop.permute.xlu0 %389 }
 0x488   :  { %v356_v3 = vpop.f32.mrb[4].mxu0 }
 0x489   :  { %v357_v4 = vadd.f32 %v356_v3, %v2499_v36  ;;  %v2056_v42 = vpop.f32.mrb[5].mxu0 }
 0x48a   :  { %v359_v44 = vpop.f32.mrb[6].mxu0 }
 0x48b   :  { %v393_v45 = vadd.f32 %v388_v43, %v357_v4  ;;  %v360_v46 = vadd.f32 %v359_v44, %v2501_v38  ;;  %v2057_v47 = vpop.f32.mrb[7].mxu0 }
 0x48d   :  { %v1944_v49 = vmul.f32 -1.442695, %v393_v45  ;;  %v394_v50 = vadd.f32 %v390_v48, %v360_v46 }
 0x48f   :  { %2201 = vpow2.f32 %v1944_v49  ;;  %v1945_v51 = vmul.f32 -1.442695, %v394_v50 }
 0x491   :  { %2203 = vpow2.f32 %v1945_v51 }
 0x499   :  { %v2202_v52 = vpop.eup %2201 }
 0x49a   :  { %v401_v53 = vadd.f32 1.0, %v2202_v52 }
 0x49b   :  { %v2204_v54 = vpop.eup %2203 }
 0x49c   :  { %2205 = vrcp.f32 %v401_v53  ;;  %v402_v55 = vadd.f32 1.0, %v2204_v54 }
 0x49e   :  { %2207 = vrcp.f32 %v402_v55 }
 0x4a6   :  { %v2206_v56 = vpop.eup %2205 }
 0x4a7   :  { %v407_v57 = vmul.f32 %v2206_v56, %v315_v34 }
 0x4a8   :  { %v2208_v58 = vpop.eup %2207 }
 0x4a9   :  { %411 = vrot.lane.b32.xlu1 %v407_v57, %s2386_s11  ;;  %v408_v59 = vmul.f32 %v2208_v58, %v319_v1  ;;  %v737_v57 = vld [vmem:[%s2954_s1] sm:$0xff]  ;;  %v738_v58 = vld [vmem:[%s2954_s1 + $0x8] sm:$0xff] }
 0x4ab   :  { %413 = vrot.lane.b32.xlu0 %v408_v59, %s2386_s11  ;;  %v739_v59 = vld [vmem:[%s2954_s1 + $0x10] sm:$0xff] }
 0x4ad   :  { %365 = vrot.lane.b32.xlu1 %v313_v37, %s2386_s11 }
 0x4af   :  { %367 = vrot.lane.b32.xlu0 %v317_v39, %s2386_s11 }
 0x51b   :  { %v412_v60 = vpop.permute.xlu1 %411 }
 0x51c   :  { %v417_v61 = vadd.f32 %v412_v60, %v357_v4 }
 0x51d   :  { %v414_v62 = vpop.permute.xlu0 %413 }
 0x51e   :  { %2209 = vtanh.f32 %v417_v61  ;;  %v418_v63 = vadd.f32 %v414_v62, %v360_v46 }
 0x51f   :  { %v366_v9 = vpop.permute.xlu1 %365 }
 0x520   :  { %2211 = vtanh.f32 %v418_v63  ;;  %v371_v12 = vadd.f32 %v366_v9, %v357_v4  ;;  %v2171_v63 = vld [vmem:[%s2955_s2 + $0xc] ss:$20 sps:$4 sm:$0xff]  }
 0x521   :  { %v368_v10 = vpop.permute.xlu0 %367  ;;  %v2173_v9 = vld [vmem:[%s2956_s3] sm:$0xff]  }
 0x522   :  { %v372_v13 = vadd.f32 %v368_v10, %v360_v46  ;;  %v1942_v15 = vmul.f32 -1.442695, %v371_v12  ;;  %v2174_v10 = vld [vmem:[%s2956_s3 + $0x8] sm:$0xff]   ;;  %v2175_v12 = vld [vmem:[%s2956_s3 + $0x10] sm:$0xff]  }
 0x524   :  { %v1943_v16 = vmul.f32 -1.442695, %v372_v13  ;;  %2213 = vpow2.f32 %v1942_v15 }
 0x526   :  { %2215 = vpow2.f32 %v1943_v16 }
 0x528   :  { %v2210_v0 = vpop.eup %2209 }
 0x529   :  { %427 = vrot.lane.b32.xlu1 %v2210_v0, %s2387_s16 }
 0x52a   :  { %v2212_v7 = vpop.eup %2211 }
 0x52b   :  { %429 = vrot.lane.b32.xlu0 %v2212_v7, %s2387_s16  ;;  %v2172_v7 = vld [vmem:[%s2955_s2 + $0x34] ss:$20 sps:$4 sm:$0xff]  }
 0x52e   :  { %v2214_v17 = vpop.eup %2213 }
 0x52f   :  { %v379_v21 = vadd.f32 1.0, %v2214_v17  ;;  %v742_v17 = vand.u32 127, %v54_v14 }
 0x530   :  { %v2216_v18 = vpop.eup %2215 }
 0x531   :  { %v380_v22 = vadd.f32 1.0, %v2216_v18  ;;  %2217 = vrcp.f32 %v379_v21  ;;  %v740_v21 = vld [vmem:[%s2954_s1 + $0x18] sm:$0xff] }
 0x533   :  { %2219 = vrcp.f32 %v380_v22  ;;  %v2176_v22 = vld [vmem:[%s2956_s3 + $0x18] sm:$0xff]  }
 0x53b   :  { %v2218_v23 = vpop.eup %2217 }
 0x53c   :  { %v421_v25 = vsub.f32 1.0, %v2218_v23 }
 0x53d   :  { %v2220_v24 = vpop.eup %2219 }
 0x53e   :  { %v422_v26 = vsub.f32 1.0, %v2220_v24  ;;  %v423_v30 = vmul.f32 %v421_v25, %v2513_v31 }
 0x540   :  { %v424_v33 = vmul.f32 %v422_v26, %v2515_v32 }
 0x59b   :  { %v428_v27 = vpop.permute.xlu1 %427 }
 0x59c   :  { %v433_v28 = vmul.f32 %v2218_v23, %v428_v27 }
 0x59d   :  { %v430_v29 = vpop.permute.xlu0 %429 }
 0x59e   :  { %v434_v5 = vmul.f32 %v2220_v24, %v430_v29  ;;  %v2546_v6 = vadd.f32 %v433_v28, %v423_v30 }
 0x5a0   :  { %v2548_v34 = vadd.f32 %v434_v5, %v424_v33 }
 0x5a2   :  { %v437_v35 = vpack.c.bf16 %v2548_v34, %v2546_v6 }
 0x5a4   :  { %1946 = vmatmul.mubr.msk.bf16.vlgmr.msra.gmra.mrb[8].mxu1 %vm108_vm0, %v437_v35 }
 0x5a5   :  { %2068 = vmatprep.mubr.msk.bf16.mxu1 %vm2385_vm1, %v2384_v8  ;;  %2065 = vmatpush3.bf16.msra.mxu1 %v2171_v63 }
 0x5a6   :  { %2066 = vmatprep.subr.bf16.mxu1 %v2384_v8 }
 0x5a9   :  { %2067 = vmatpush3.bf16.msra.mxu1 %v2172_v7 }
 0x5aa   :  { %2084 = vmatprep.subr.bf16.mxu1 %v2384_v8 }
 0x677   :  { %v475_v37 = vpop.f32.mrb[8].mxu1 }
 0x678   :  { %v477_v39 = vpop.f32.mrb[9].mxu1  ;;  %v476_v32 = vadd.f32 %v475_v37, %v2479_v20 }
 0x679   :  { %v478_v40 = vadd.f32 %v477_v39, %v2477_v19  ;;  %v479_v31 = vpop.f32.mrb[10].mxu1 }
 0x67a   :  { %v480_v1 = vadd.f32 %v479_v31, %v2479_v20  ;;  %v481_v41 = vpop.f32.mrb[11].mxu1 }
 0x67b   :  { %v482_v3 = vadd.f32 %v481_v41, %v2477_v19  ;;  %550 = vrot.lane.b32.xlu1 %v478_v40, %s2386_s11 }
 0x67c   :  { %v484_v4 = vpack.c.bf16 %v480_v1, %v476_v32 }
 0x67d   :  { %552 = vrot.lane.b32.xlu0 %v482_v3, %s2386_s11 }
 0x67e   :  { %2059 = vmatpush3.bf16.msra.mxu0 %v484_v4 }
 0x67f   :  { %2072 = vmatprep.subr.bf16.mxu0 %v2173_v9 }
 0x681   :  { %2061 = vmatmul.mubr.msk.bf16.vlgmr.msra.gmra.mrb[8].mxu0 %vm64_vm2, %v2465_v11 }
 0x682   :  { %2073 = vmatpush3.bf16.msra.mxu0 %v2173_v9 }
 0x683   :  { %2074 = vmatprep.subr.bf16.mxu0 %v2174_v10 }
 0x686   :  { %2075 = vmatpush3.bf16.msra.mxu0 %v2174_v10 }
 0x687   :  { %2076 = vmatprep.subr.bf16.mxu0 %v2175_v12 }
 0x68a   :  { %2077 = vmatpush3.bf16.msra.mxu0 %v2175_v12 }
 0x68b   :  { %2078 = vmatprep.subr.bf16.mxu0 %v2176_v22 }
 0x68e   :  { %2079 = vmatpush3.bf16.msra.mxu0 %v2176_v22 }
 0x68f   :  { %2100 = vmatprep.subr.bf16.mxu0 %v2384_v8 }
 0x6ed   :  { %v551_v45 = vpop.permute.xlu1 %550 }
 0x6ef   :  { %v553_v48 = vpop.permute.xlu0 %552 }
 0x754   :  { %v519_v42 = vpop.f32.mrb[8].mxu0 }
 0x755   :  { %v2564_v43 = vadd.f32 %v519_v42, %v2499_v36  ;;  %v2062_v44 = vpop.f32.mrb[9].mxu0 }
 0x756   :  { %v522_v46 = vpop.f32.mrb[10].mxu0 }
 0x757   :  { %v556_v20 = vadd.f32 %v551_v45, %v2564_v43  ;;  %v2568_v19 = vadd.f32 %v522_v46, %v2501_v38  ;;  %v2063_v47 = vpop.f32.mrb[11].mxu0  ;;  %v2627_v46 = vld [vmem:[%s2955_s2 + $0x8] ss:$20 sps:$4 sm:$0xff]  }
 0x759   :  { %v1950_v49 = vmul.f32 -1.442695, %v556_v20  ;;  %v557_v50 = vadd.f32 %v553_v48, %v2568_v19 }
 0x75b   :  { %2221 = vpow2.f32 %v1950_v49  ;;  %v1951_v51 = vmul.f32 -1.442695, %v557_v50 }
 0x75d   :  { %2223 = vpow2.f32 %v1951_v51 }
 0x765   :  { %v2222_v11 = vpop.eup %2221 }
 0x766   :  { %v564_v52 = vadd.f32 1.0, %v2222_v11 }
 0x767   :  { %v2224_v36 = vpop.eup %2223 }
 0x768   :  { %2225 = vrcp.f32 %v564_v52  ;;  %v565_v53 = vadd.f32 1.0, %v2224_v36 }
 0x76a   :  { %2227 = vrcp.f32 %v565_v53 }
 0x772   :  { %v2226_v54 = vpop.eup %2225 }
 0x773   :  { %v570_v55 = vmul.f32 %v2226_v54, %v478_v40 }
 0x774   :  { %v2228_v56 = vpop.eup %2227 }
 0x775   :  { %574 = vrot.lane.b32.xlu1 %v570_v55, %s2386_s11  ;;  %v571_v38 = vmul.f32 %v2228_v56, %v482_v3  ;;  %v1964_v55 = vld [vmem:[%s2957_s4 + $0x7] ss:$0 sm:$0xff] }
 0x777   :  { %576 = vrot.lane.b32.xlu0 %v571_v38, %s2386_s11 }
 0x779   :  { %528 = vrot.lane.b32.xlu1 %v476_v32, %s2386_s11 }
 0x77b   :  { %530 = vrot.lane.b32.xlu0 %v480_v1, %s2386_s11 }
 0x77d   :  { %744 = vperm.xlu1 %2163, %v737_v57  }
 0x77f   :  { %747 = vperm.xlu0 %2164, %v738_v58  }
 0x783   :  { %750 = vperm.xlu0 %2164, %v739_v59  }
 0x7e7   :  { %v575_v60 = vpop.permute.xlu1 %574 }
 0x7e8   :  { %v580_v61 = vadd.f32 %v575_v60, %v2564_v43 }
 0x7e9   :  { %v577_v62 = vpop.permute.xlu0 %576 }
 0x7ea   :  { %2229 = vtanh.f32 %v580_v61  ;;  %v581_v0 = vadd.f32 %v577_v62, %v2568_v19 }
 0x7eb   :  { %v529_v16 = vpop.permute.xlu1 %528 }
 0x7ec   :  { %2231 = vtanh.f32 %v581_v0  ;;  %v534_v27 = vadd.f32 %v529_v16, %v2564_v43 }
 0x7ed   :  { %v531_v18 = vpop.permute.xlu0 %530 }
 0x7ee   :  { %v535_v28 = vadd.f32 %v531_v18, %v2568_v19  ;;  %v1948_v29 = vmul.f32 -1.442695, %v534_v27 }
 0x7f0   :  { %v1949_v30 = vmul.f32 -1.442695, %v535_v28  ;;  %2233 = vpow2.f32 %v1948_v29 }
 0x7f2   :  { %2235 = vpow2.f32 %v1949_v30 }
 0x7f4   :  { %v2230_v13 = vpop.eup %2229 }
 0x7f5   :  { %590 = vrot.lane.b32.xlu1 %v2230_v13, %s2387_s16 }
 0x7f6   :  { %v2232_v15 = vpop.eup %2231 }
 0x7f9   :  { %592 = vrot.lane.b32.xlu1 %v2232_v15, %s2387_s16 }
 0x7fa   :  { %v2234_v33 = vpop.eup %2233 }
 0x7fb   :  { %v542_v35 = vadd.f32 1.0, %v2234_v33 }
 0x7fc   :  { %v745_v23 = vpop.permute.xlu1 %744  ;;  %v2236_v5 = vpop.eup %2235 }
 0x7fd   :  { %753 = vperm.xlu1 %2163, %v740_v21   ;;  %vm755_vm3 = vcmp.eq.s32.totalorder %v742_v17, %v745_v23  ;;  %v543_v37 = vadd.f32 1.0, %v2236_v5  ;;  %2237 = vrcp.f32 %v542_v35 }
 0x7fe   :  { %v1960_v24 = vsel %vm755_vm3, 1.0, %v2384_v8  ;;  %v748_v25 = vpop.permute.xlu0 %747  ;;  %vm1810_vm3 = vcmask 1044224  }
 0x7ff   :  { %vm756_vm4 = vcmp.eq.s32.totalorder %v742_v17, %v748_v25  ;;  %2239 = vrcp.f32 %v543_v37 }
 0x800   :  { %v1961_v14 = vsel %vm756_vm4, 1.0, %v2384_v8  ;;  %vm1844_vm4 = vcmask 254976  }
 0x801   :  { %v767_v26 = vpack.c.bf16 %v1961_v14, %v1960_v24 }
 0x803   :  { %2080 = vmatprep.mubr.msk.bf16.mxu0 %vm807_vm5, %v767_v26 }
 0x807   :  { %v2238_v39 = vpop.eup %2237 }
 0x808   :  { %v584_v32 = vsub.f32 1.0, %v2238_v39 }
 0x809   :  { %v2240_v40 = vpop.eup %2239 }
 0x80a   :  { %v585_v1 = vsub.f32 1.0, %v2240_v40  ;;  %v586_v4 = vmul.f32 %v584_v32, %v2546_v6  ;;  %v2636_v6 = vld [vmem:[%s2955_s2 + $0x30] ss:$20 sps:$4 sm:$0xff]  }
 0x80c   :  { %v587_v42 = vmul.f32 %v585_v1, %v2548_v34  ;;  %v751_v34 = vpop.permute.xlu0 %750 }
 0x80d   :  { %vm757_vm6 = vcmp.eq.s32.totalorder %v742_v17, %v751_v34 }
 0x80e   :  { %v1962_v48 = vsel %vm757_vm6, 1.0, %v2384_v8  ;;  %vm1903_vm6 = vcmask 1024  }
 0x867   :  { %v591_v31 = vpop.permute.xlu1 %590 }
 0x868   :  { %v596_v41 = vmul.f32 %v2238_v39, %v591_v31 }
 0x86a   :  { %v2620_v44 = vadd.f32 %v596_v41, %v586_v4 }
 0x86b   :  { %v593_v3 = vpop.permute.xlu1 %592 }
 0x86c   :  { %v597_v43 = vmul.f32 %v2240_v40, %v593_v3 }
 0x86e   :  { %v2622_v45 = vadd.f32 %v597_v43, %v587_v42 }
 0x870   :  { %v600_v20 = vpack.c.bf16 %v2622_v45, %v2620_v44 }
 0x872   :  { %2069 = vmatmul.mubr.msk.bf16.vlgmr.msra.gmra.mrb[12].mxu1 %vm108_vm0, %v600_v20 }
 0x873   :  { %2085 = vmatpush3.bf16.msra.mxu1 %v2627_v46  ;;  %2088 = vmatprep.mubr.msk.bf16.mxu1 %vm2385_vm1, %v2384_v8 }
 0x874   :  { %2086 = vmatprep.subr.bf16.mxu1 %v2384_v8 }
 0x877   :  { %2087 = vmatpush3.bf16.msra.mxu1 %v2636_v6 }
 0x878   :  { %2092 = vmatprep.subr.bf16.mxu1 %v2384_v8 }
 0x87a   :  { %2089 = vmatmul.mubr.bf16.vlgmr.msra.gmra.mrb[16].mxu1 %v2383_v2 }
 0x87b   :  { %2093 = vmatpush3.bf16.msra.mxu1 %v2627_v46  ;;  %2096 = vmatprep.mubr.msk.bf16.mxu1 %vm2385_vm1, %v2384_v8 }
 0x87c   :  { %v754_v19 = vpop.permute.xlu1 %753  ;;  %2094 = vmatprep.subr.bf16.mxu1 %v2384_v8 }
 0x87d   :  { %vm758_vm7 = vcmp.eq.s32.totalorder %v742_v17, %v754_v19 }
 0x87e   :  { %v1963_v47 = vsel %vm758_vm7, 1.0, %v2384_v8  ;;  %vm1912_vm7 = vcmask 0  }
 0x87f   :  { %v768_v49 = vpack.c.bf16 %v1963_v47, %v1962_v48  ;;  %2095 = vmatpush3.bf16.msra.mxu1 %v2636_v6 }
 0x880   :  { %2108 = vmatprep.subr.bf16.mxu1 %v2384_v8 }
 0x881   :  { %2081 = vmatmul.mubr.msk.bf16.vlgmr.msra.gmra.mrb[12].mxu0 %vm807_vm5, %v768_v49  ;;  %vm1889_vm5 = vcmask 257026  }
 0x882   :  { %2101 = vmatpush3.bf16.msra.mxu0 %v2627_v46  ;;  %2104 = vmatprep.mubr.msk.bf16.mxu0 %vm2385_vm1, %v2384_v8 }
 0x883   :  { %2102 = vmatprep.subr.bf16.mxu0 %v2384_v8 }
 0x886   :  { %2103 = vmatpush3.bf16.msra.mxu0 %v2636_v6 }
 0x887   :  { %2116 = vmatprep.subr.bf16.mxu0 %v2384_v8 }
 0x945   :  { %v2659_v2 = vpop.f32.mrb[12].mxu1 }
 0x946   :  { %v2070_v50 = vpop.f32.mrb[13].mxu1 }
 0x947   :  { %v2661_v51 = vpop.f32.mrb[14].mxu1 }
 0x948   :  { %v2071_v11 = vpop.f32.mrb[15].mxu1 }
 0x94d   :  { %v912_v52 = vpop.f32.mrb[16].mxu1 }
 0x94e   :  { %v2090_v36 = vpop.f32.mrb[17].mxu1 }
 0x94f   :  { %v915_v53 = vpop.f32.mrb[18].mxu1 }
 0x950   :  { %v2091_v54 = vpop.f32.mrb[19].mxu1 }
 0x954   :  { %v2082_v56 = vpop.f32.mrb[12].mxu0 }
 0x955   :  { %v2666_v38 = vadd.f32 %v2082_v56, %v1964_v55  ;;  %v848_v57 = vpop.f32.mrb[13].mxu0 }
 0x956   :  { %v849_v58 = vadd.f32 %v1964_v55, %v848_v57  ;;  %v2083_v59 = vpop.f32.mrb[14].mxu0 }
 0x957   :  { %v2668_v60 = vadd.f32 %v2083_v59, %v1964_v55  ;;  %v851_v61 = vpop.f32.mrb[15].mxu0 }
 0x958   :  { %v2670_v62 = vadd.f32 %v1964_v55, %v851_v61  ;;  %v918_v63 = vadd.f32 %v912_v52, %v849_v58 }
 0x95a   :  { %2241 = vtanh.f32 %v918_v63  ;;  %v1973_v7 = vmul.f32 -1.442695, %v918_v63 }
 0x95c   :  { %2243 = vpow2.f32 %v1973_v7 }
 0x964   :  { %v2242_v0 = vpop.eup %2241 }
 0x965   :  { %928 = vrot.lane.b32.xlu0 %v2242_v0, %s2387_s16 }
 0x966   :  { %v2244_v9 = vpop.eup %2243 }
 0x967   :  { %v922_v10 = vadd.f32 1.0, %v2244_v9 }
 0x969   :  { %2245 = vrcp.f32 %v922_v10 }
 0x973   :  { %v2246_v12 = vpop.eup %2245 }
 0x974   :  { %v926_v16 = vmul.f32 0.0, %v2246_v12 }
 0x9d7   :  { %v929_v13 = vpop.permute.xlu0 %928 }
 0x9d8   :  { %v931_v15 = vmul.f32 %v2246_v12, %v929_v13 }
 0x9da   :  { %933 = vrot.lane.b32.xlu1 %v931_v15, %s2386_s11 }
 0xa4c   :  { %v934_v17 = vpop.permute.xlu1 %933 }
 0xa4d   :  { %v936_v18 = vadd.f32 %v934_v17, %v926_v16 }
 0xa4f   :  { %2247 = vtanh.f32 %v936_v18  ;;  %v1002_v32 = vrot.slane %v936_v18, 4 }
 0xa59   :  { %v2248_v21 = vpop.eup %2247 }
 0xa5a   :  { %939 = vrot.lane.b32.xlu0 %v2248_v21, %s2387_s16 }
 0xacc   :  { %v940_v22 = vpop.permute.xlu0 %939 }
 0xacd   :  { %v2675_v23 = vmul.f32 %v2246_v12, %v940_v22 }
 0xacf   :  { %v943_v24 = vpack.c.bf16 %v2675_v23, %v2675_v23 }
 0xad1   :  { %945 = vrot.lane.b32.xlu1 %v943_v24, %s2386_s11 }
 0xb43   :  { %v946_v25 = vpop.permute.xlu1 %945 }
 0xb44   :  { %2097 = vmatmul.mubr.msk.bf16.vlgmr.msra.gmra.mrb[20].mxu1 %vm108_vm0, %v946_v25 }
 0xb45   :  { %2109 = vmatpush3.bf16.msra.mxu1 %v2627_v46  ;;  %2112 = vmatprep.mubr.msk.bf16.mxu1 %vm2385_vm1, %v2384_v8 }
 0xb46   :  { %2110 = vmatprep.subr.bf16.mxu1 %v2384_v8 }
 0xb49   :  { %2111 = vmatpush3.bf16.msra.mxu1 %v2636_v6 }
 0xb4a   :  { %2124 = vmatprep.subr.bf16.mxu1 %v2384_v8 }
 0xc17   :  { %v984_v14 = vpop.f32.mrb[20].mxu1 }
 0xc18   :  { %v991_v26 = vrot.slane %v984_v14, 4  ;;  %v2098_v27 = vpop.f32.mrb[21].mxu1 }
 0xc19   :  { %v987_v28 = vpop.f32.mrb[22].mxu1 }
 0xc1a   :  { %v993_v29 = vadd.f32 %v991_v26, %v849_v58  ;;  %v2099_v30 = vpop.f32.mrb[23].mxu1 }
 0xc1c   :  { %2249 = vtanh.f32 %v993_v29  ;;  %v1975_v5 = vmul.f32 -1.442695, %v993_v29 }
 0xc1e   :  { %2251 = vpow2.f32 %v1975_v5 }
 0xc26   :  { %v2250_v33 = vpop.eup %2249 }
 0xc27   :  { %1006 = vrot.lane.b32.xlu0 %v2250_v33, %s2387_s16 }
 0xc28   :  { %v2252_v35 = vpop.eup %2251 }
 0xc29   :  { %v997_v37 = vadd.f32 1.0, %v2252_v35 }
 0xc2b   :  { %2253 = vrcp.f32 %v997_v37 }
 0xc35   :  { %v2254_v39 = vpop.eup %2253 }
 0xc36   :  { %v1004_v1 = vmul.f32 %v2254_v39, %v1002_v32 }
 0xc99   :  { %v1007_v40 = vpop.permute.xlu0 %1006 }
 0xc9a   :  { %v1009_v31 = vmul.f32 %v2254_v39, %v1007_v40 }
 0xc9c   :  { %1011 = vrot.lane.b32.xlu1 %v1009_v31, %s2386_s11 }
 0xd0e   :  { %v1012_v41 = vpop.permute.xlu1 %1011 }
 0xd0f   :  { %v1014_v3 = vadd.f32 %v1012_v41, %v1004_v1 }
 0xd11   :  { %2255 = vtanh.f32 %v1014_v3  ;;  %v1078_v58 = vrot.slane %v1014_v3, 4 }
 0xd1b   :  { %v2256_v4 = vpop.eup %2255 }
 0xd1c   :  { %1017 = vrot.lane.b32.xlu0 %v2256_v4, %s2387_s16 }
 0xd8e   :  { %v1018_v42 = vpop.permute.xlu0 %1017 }
 0xd8f   :  { %v2690_v43 = vmul.f32 %v2254_v39, %v1018_v42 }
 0xd91   :  { %v1021_v20 = vpack.c.bf16 %v2690_v43, %v2690_v43 }
 0xd93   :  { %v1023_v34 = vrot.slane %v1021_v20, 2 }
 0xd95   :  { %1024 = vrot.lane.b32.xlu1 %v1023_v34, %s2386_s11 }
 0xe07   :  { %v1025_v19 = vpop.permute.xlu1 %1024 }
 0xe08   :  { %2105 = vmatmul.mubr.msk.bf16.vlgmr.msra.gmra.mrb[16].mxu0 %vm108_vm0, %v1025_v19 }
 0xe09   :  { %2117 = vmatpush3.bf16.msra.mxu0 %v2627_v46  ;;  %2120 = vmatprep.mubr.msk.bf16.mxu0 %vm2385_vm1, %v2384_v8 }
 0xe0a   :  { %2118 = vmatprep.subr.bf16.mxu0 %v2384_v8 }
 0xe0d   :  { %2119 = vmatpush3.bf16.msra.mxu0 %v2636_v6 }
 0xe0e   :  { %2132 = vmatprep.subr.bf16.mxu0 %v2384_v8 }
 0xedb   :  { %v1063_v47 = vpop.f32.mrb[16].mxu0 }
 0xedc   :  { %v1069_v48 = vadd.f32 %v1063_v47, %v2670_v62  ;;  %v2106_v49 = vpop.f32.mrb[17].mxu0 }
 0xedd   :  { %v1066_v50 = vpop.f32.mrb[18].mxu0 }
 0xede   :  { %2257 = vtanh.f32 %v1069_v48  ;;  %v2107_v11 = vpop.f32.mrb[19].mxu0  ;;  %v1977_v36 = vmul.f32 -1.442695, %v1069_v48 }
 0xee0   :  { %2259 = vpow2.f32 %v1977_v36 }
 0xee8   :  { %v2258_v52 = vpop.eup %2257 }
 0xee9   :  { %1082 = vrot.lane.b32.xlu0 %v2258_v52, %s2387_s16 }
 0xeea   :  { %v2260_v53 = vpop.eup %2259 }
 0xeeb   :  { %v1073_v54 = vadd.f32 1.0, %v2260_v53 }
 0xeed   :  { %2261 = vrcp.f32 %v1073_v54 }
 0xef7   :  { %v2262_v55 = vpop.eup %2261 }
 0xef8   :  { %v1080_v59 = vmul.f32 %v2262_v55, %v1078_v58 }
 0xf5b   :  { %v1083_v56 = vpop.permute.xlu0 %1082 }
 0xf5c   :  { %v1085_v57 = vmul.f32 %v2262_v55, %v1083_v56 }
 0xf5e   :  { %1087 = vrot.lane.b32.xlu1 %v1085_v57, %s2386_s11 }
 0xfd0   :  { %v1088_v61 = vpop.permute.xlu1 %1087 }
 0xfd1   :  { %v1090_v63 = vadd.f32 %v1088_v61, %v1080_v59 }
 0xfd3   :  { %2263 = vtanh.f32 %v1090_v63  ;;  %v1156_v29 = vrot.slane %v1090_v63, 4 }
 0xfdd   :  { %v2264_v0 = vpop.eup %2263 }
 0xfde   :  { %1093 = vrot.lane.b32.xlu0 %v2264_v0, %s2387_s16 }
0x1050   :  { %v1094_v7 = vpop.permute.xlu0 %1093 }
0x1051   :  { %v2706_v9 = vmul.f32 %v2262_v55, %v1094_v7 }
0x1053   :  { %v1097_v10 = vpack.c.bf16 %v2706_v9, %v2706_v9 }
0x1055   :  { %1099 = vrot.lane.b32.xlu1 %v1097_v10, %s2386_s11 }
0x10c7   :  { %v1100_v12 = vpop.permute.xlu1 %1099 }
0x10c8   :  { %2113 = vmatmul.mubr.msk.bf16.vlgmr.msra.gmra.mrb[24].mxu1 %vm108_vm0, %v1100_v12 }
0x10c9   :  { %2125 = vmatpush3.bf16.msra.mxu1 %v2627_v46  ;;  %2128 = vmatprep.mubr.msk.bf16.mxu1 %vm2385_vm1, %v2384_v8 }
0x10ca   :  { %2126 = vmatprep.subr.bf16.mxu1 %v2384_v8 }
0x10cd   :  { %2127 = vmatpush3.bf16.msra.mxu1 %v2636_v6 }
0x10ce   :  { %2140 = vmatprep.subr.bf16.mxu1 %v2384_v8 }
0x119b   :  { %v1138_v13 = vpop.f32.mrb[24].mxu1 }
0x119c   :  { %v1145_v15 = vrot.slane %v1138_v13, 4  ;;  %v2114_v16 = vpop.f32.mrb[25].mxu1 }
0x119d   :  { %v1141_v17 = vpop.f32.mrb[26].mxu1 }
0x119e   :  { %v1147_v18 = vadd.f32 %v1145_v15, %v2670_v62  ;;  %v2115_v21 = vpop.f32.mrb[27].mxu1 }
0x11a0   :  { %2265 = vtanh.f32 %v1147_v18  ;;  %v1979_v24 = vmul.f32 -1.442695, %v1147_v18 }
0x11a2   :  { %2267 = vpow2.f32 %v1979_v24 }
0x11aa   :  { %v2266_v22 = vpop.eup %2265 }
0x11ab   :  { %1160 = vrot.lane.b32.xlu0 %v2266_v22, %s2387_s16 }
0x11ac   :  { %v2268_v25 = vpop.eup %2267 }
0x11ad   :  { %v1151_v14 = vadd.f32 1.0, %v2268_v25 }
0x11af   :  { %2269 = vrcp.f32 %v1151_v14 }
0x11b9   :  { %v2270_v26 = vpop.eup %2269 }
0x11ba   :  { %v1158_v30 = vmul.f32 %v2270_v26, %v1156_v29 }
0x121d   :  { %v1161_v27 = vpop.permute.xlu0 %1160 }
0x121e   :  { %v1163_v28 = vmul.f32 %v2270_v26, %v1161_v27 }
0x1220   :  { %1165 = vrot.lane.b32.xlu1 %v1163_v28, %s2386_s11 }
0x1292   :  { %v1166_v33 = vpop.permute.xlu1 %1165 }
0x1293   :  { %v1168_v5 = vadd.f32 %v1166_v33, %v1158_v30 }
0x1295   :  { %2271 = vtanh.f32 %v1168_v5  ;;  %v1232_v50 = vrot.slane %v1168_v5, 4 }
0x129f   :  { %v2272_v62 = vpop.eup %2271 }
0x12a0   :  { %1171 = vrot.lane.b32.xlu0 %v2272_v62, %s2387_s16 }
0x1312   :  { %v1172_v35 = vpop.permute.xlu0 %1171 }
0x1313   :  { %v2722_v37 = vmul.f32 %v2270_v26, %v1172_v35 }
0x1315   :  { %v1175_v39 = vpack.c.bf16 %v2722_v37, %v2722_v37 }
0x1317   :  { %v1177_v40 = vrot.slane %v1175_v39, 2 }
0x1319   :  { %1178 = vrot.lane.b32.xlu1 %v1177_v40, %s2386_s11 }
0x138b   :  { %v1179_v31 = vpop.permute.xlu1 %1178 }
0x138c   :  { %2121 = vmatmul.mubr.msk.bf16.vlgmr.msra.gmra.mrb[20].mxu0 %vm108_vm0, %v1179_v31 }
0x138d   :  { %2133 = vmatpush3.bf16.msra.mxu0 %v2627_v46  ;;  %2136 = vmatprep.mubr.msk.bf16.mxu0 %vm2385_vm1, %v2384_v8 }
0x138e   :  { %2134 = vmatprep.subr.bf16.mxu0 %v2384_v8 }
0x1391   :  { %2135 = vmatpush3.bf16.msra.mxu0 %v2636_v6 }
0x145f   :  { %v1217_v32 = vpop.f32.mrb[20].mxu0 }
0x1460   :  { %v1223_v1 = vadd.f32 %v1217_v32, %v2666_v38  ;;  %v2122_v41 = vpop.f32.mrb[21].mxu0 }
0x1461   :  { %v1220_v3 = vpop.f32.mrb[22].mxu0 }
0x1462   :  { %2273 = vtanh.f32 %v1223_v1  ;;  %v2123_v4 = vpop.f32.mrb[23].mxu0  ;;  %v1981_v20 = vmul.f32 -1.442695, %v1223_v1 }
0x1464   :  { %2275 = vpow2.f32 %v1981_v20 }
0x146c   :  { %v2274_v42 = vpop.eup %2273 }
0x146d   :  { %1236 = vrot.lane.b32.xlu0 %v2274_v42, %s2387_s16 }
0x146e   :  { %v2276_v34 = vpop.eup %2275 }
0x146f   :  { %v1227_v19 = vadd.f32 1.0, %v2276_v34 }
0x1471   :  { %2277 = vrcp.f32 %v1227_v19 }
0x147b   :  { %v2278_v47 = vpop.eup %2277 }
0x147c   :  { %v1234_v11 = vmul.f32 %v2278_v47, %v1232_v50 }
0x14df   :  { %v1237_v48 = vpop.permute.xlu0 %1236 }
0x14e0   :  { %v1239_v49 = vmul.f32 %v2278_v47, %v1237_v48 }
0x14e2   :  { %1241 = vrot.lane.b32.xlu1 %v1239_v49, %s2386_s11 }
0x1554   :  { %v1242_v52 = vpop.permute.xlu1 %1241 }
0x1555   :  { %v1244_v36 = vadd.f32 %v1242_v52, %v1234_v11 }
0x1557   :  { %2279 = vtanh.f32 %v1244_v36 }
0x1561   :  { %v2280_v53 = vpop.eup %2279 }
0x1562   :  { %1247 = vrot.lane.b32.xlu0 %v2280_v53, %s2387_s16 }
0x15d4   :  { %v1248_v54 = vpop.permute.xlu0 %1247 }
0x15d5   :  { %v2737_v55 = vmul.f32 %v2278_v47, %v1248_v54 }
0x15d7   :  { %v1251_v56 = vpack.c.bf16 %v2737_v55, %v2737_v55 }
0x15d9   :  { %1253 = vrot.lane.b32.xlu1 %v1251_v56, %s2386_s11 }
0x164b   :  { %v1254_v57 = vpop.permute.xlu1 %1253 }
0x164c   :  { %2129 = vmatmul.mubr.msk.bf16.vlgmr.msra.gmra.mrb[28].mxu1 %vm108_vm0, %v1254_v57 }
0x164d   :  { %2141 = vmatpush3.bf16.msra.mxu1 %v2627_v46  ;;  %2144 = vmatprep.mubr.msk.bf16.mxu1 %vm2385_vm1, %v2384_v8 }
0x164e   :  { %2142 = vmatprep.subr.bf16.mxu1 %v2384_v8 }
0x1651   :  { %2143 = vmatpush3.bf16.msra.mxu1 %v2636_v6  ;;  %v1310_v6 = vrot.slane %v1244_v36, 4 }
0x171f   :  { %v1292_v58 = vpop.f32.mrb[28].mxu1 }
0x1720   :  { %v1299_v59 = vrot.slane %v1292_v58, 4  ;;  %v2130_v61 = vpop.f32.mrb[29].mxu1 }
0x1721   :  { %v1295_v63 = vpop.f32.mrb[30].mxu1  ;;  %v1484_v61 = vrot.slane %v2690_v43, 4 }
0x1722   :  { %v1301_v0 = vadd.f32 %v1299_v59, %v2666_v38  ;;  %v2131_v7 = vpop.f32.mrb[31].mxu1  ;;  %v1487_v59 = vrot.slane %v2722_v37, 4 }
0x1724   :  { %2281 = vtanh.f32 %v1301_v0  ;;  %v1983_v12 = vmul.f32 -1.442695, %v1301_v0 }
0x1726   :  { %2283 = vpow2.f32 %v1983_v12 }
0x172e   :  { %v2282_v10 = vpop.eup %2281 }
0x172f   :  { %1314 = vrot.lane.b32.xlu0 %v2282_v10, %s2387_s16  ;;  %v1499_v10 = vcombine.low %v2675_v23, %v1484_v61 }
0x1730   :  { %v2284_v46 = vpop.eup %2283 }
0x1731   :  { %v1305_v13 = vadd.f32 1.0, %v2284_v46 }
0x1733   :  { %2285 = vrcp.f32 %v1305_v13 }
0x173d   :  { %v2286_v15 = vpop.eup %2285 }
0x173e   :  { %v1312_v18 = vmul.f32 %v2286_v15, %v1310_v6  ;;  %v2179_v6 = vld [vmem:[%s2955_s2 + $0x10] ss:$20 sps:$4 sm:$0xff]  }
0x173f   :  { %2148 = vmatprep.subr.bf16.mxu0 %v2179_v6 }
0x17a1   :  { %v1315_v16 = vpop.permute.xlu0 %1314 }
0x17a2   :  { %v1317_v17 = vmul.f32 %v2286_v15, %v1315_v16 }
0x17a4   :  { %1319 = vrot.lane.b32.xlu1 %v1317_v17, %s2386_s11 }
0x1816   :  { %v1320_v21 = vpop.permute.xlu1 %1319 }
0x1817   :  { %v1322_v22 = vadd.f32 %v1320_v21, %v1312_v18  ;;  %v2180_v18 = vld [vmem:[%s2955_s2 + $0x38] ss:$20 sps:$4 sm:$0xff]  }
0x1819   :  { %2287 = vtanh.f32 %v1322_v22  ;;  %v1386_v41 = vrot.slane %v1322_v22, 4 }
0x1823   :  { %v2288_v38 = vpop.eup %2287 }
0x1824   :  { %1325 = vrot.lane.b32.xlu0 %v2288_v38, %s2387_s16 }
0x1896   :  { %v1326_v24 = vpop.permute.xlu0 %1325 }
0x1897   :  { %v2752_v25 = vmul.f32 %v2286_v15, %v1326_v24 }
0x1899   :  { %v1329_v14 = vpack.c.bf16 %v2752_v25, %v2752_v25  ;;  %v1490_v38 = vrot.slane %v2752_v25, 4 }
0x189b   :  { %v1331_v26 = vrot.slane %v1329_v14, 2 }
0x189d   :  { %1332 = vrot.lane.b32.xlu1 %v1331_v26, %s2386_s11  ;;  %v1501_v26 = vcombine.low %v2737_v55, %v1490_v38 }
0x190f   :  { %v1333_v27 = vpop.permute.xlu1 %1332 }
0x1910   :  { %2137 = vmatmul.mubr.msk.bf16.vlgmr.msra.gmra.mrb[24].mxu0 %vm108_vm0, %v1333_v27 }
0x1911   :  { %2149 = vmatpush3.bf16.msra.mxu0 %v2179_v6 }
0x1912   :  { %2150 = vmatprep.subr.bf16.mxu0 %v2180_v18 }
0x1915   :  { %2151 = vmatpush3.bf16.msra.mxu0 %v2180_v18 }
0x19e3   :  { %v1371_v28 = vpop.f32.mrb[24].mxu0 }
0x19e4   :  { %v1377_v29 = vadd.f32 %v1371_v28, %v2668_v60  ;;  %v2138_v30 = vpop.f32.mrb[25].mxu0 }
0x19e5   :  { %v1374_v33 = vpop.f32.mrb[26].mxu0  ;;  %v1988_v30 = vld [vmem:[%s2957_s4 + $0x8] ss:$0 sm:$0xff] }
0x19e6   :  { %2289 = vtanh.f32 %v1377_v29  ;;  %v2139_v5 = vpop.f32.mrb[27].mxu0  ;;  %v1985_v35 = vmul.f32 -1.442695, %v1377_v29 }
0x19e8   :  { %2291 = vpow2.f32 %v1985_v35 }
0x19f0   :  { %v2290_v62 = vpop.eup %2289 }
0x19f1   :  { %1390 = vrot.lane.b32.xlu0 %v2290_v62, %s2387_s16 }
0x19f2   :  { %v2292_v39 = vpop.eup %2291 }
0x19f3   :  { %v1381_v40 = vadd.f32 1.0, %v2292_v39 }
0x19f5   :  { %2293 = vrcp.f32 %v1381_v40 }
0x19ff   :  { %v2294_v31 = vpop.eup %2293 }
0x1a00   :  { %v1388_v3 = vmul.f32 %v2294_v31, %v1386_v41 }
0x1a63   :  { %v1391_v32 = vpop.permute.xlu0 %1390 }
0x1a64   :  { %v1393_v1 = vmul.f32 %v2294_v31, %v1391_v32 }
0x1a66   :  { %1395 = vrot.lane.b32.xlu1 %v1393_v1, %s2386_s11  ;;  %v1952_v1 = vld [vmem:[%s2957_s4 + $0x4] ss:$0 sm:$0xff] }
0x1a67   :  { %v657_v41 = vadd.f32 %v1952_v1, %v2659_v2 }
0x1ad8   :  { %v1396_v4 = vpop.permute.xlu1 %1395 }
0x1ad9   :  { %v1398_v42 = vadd.f32 %v1396_v4, %v1388_v3  ;;  %v1993_v3 = vld [vmem:[%s2957_s4 + $0x9] ss:$0 sm:$0xff]  ;;  %v660_v4 = vadd.f32 %v1952_v1, %v2661_v51 }
0x1adb   :  { %2295 = vtanh.f32 %v1398_v42  ;;  %v1464_v46 = vrot.slane %v1398_v42, 4 }
0x1ae5   :  { %v2296_v20 = vpop.eup %2295 }
0x1ae6   :  { %1401 = vrot.lane.b32.xlu0 %v2296_v20, %s2387_s16 }
0x1b58   :  { %v1402_v34 = vpop.permute.xlu0 %1401 }
0x1b59   :  { %v2762_v19 = vmul.f32 %v2294_v31, %v1402_v34 }
0x1b5b   :  { %v1405_v47 = vpack.c.bf16 %v2762_v19, %v2762_v19 }
0x1b5d   :  { %1407 = vrot.lane.b32.xlu1 %v1405_v47, %s2386_s11 }
0x1bcf   :  { %v1408_v48 = vpop.permute.xlu1 %1407 }
0x1bd0   :  { %2145 = vmatmul.mubr.msk.bf16.vlgmr.msra.gmra.mrb[32].mxu1 %vm108_vm0, %v1408_v48 }
0x1ca3   :  { %v1446_v49 = vpop.f32.mrb[32].mxu1 }
0x1ca4   :  { %v1453_v50 = vrot.slane %v1446_v49, 4  ;;  %v2146_v11 = vpop.f32.mrb[33].mxu1 }
0x1ca5   :  { %v1449_v52 = vpop.f32.mrb[34].mxu1 }
0x1ca6   :  { %v1455_v36 = vadd.f32 %v1453_v50, %v2668_v60  ;;  %v2147_v53 = vpop.f32.mrb[35].mxu1  ;;  %v1500_v60 = vcombine.low %v2706_v9, %v1487_v59 }
0x1ca8   :  { %2297 = vtanh.f32 %v1455_v36  ;;  %v1987_v56 = vmul.f32 -1.442695, %v1455_v36  ;;  %v1507_v12 = vpack.c.bf16 %v1500_v60, %v1499_v10 }
0x1caa   :  { %2299 = vpow2.f32 %v1987_v56 }
0x1cb2   :  { %v2298_v54 = vpop.eup %2297 }
0x1cb3   :  { %1468 = vrot.lane.b32.xlu0 %v2298_v54, %s2387_s16 }
0x1cb4   :  { %v2300_v57 = vpop.eup %2299 }
0x1cb5   :  { %v1459_v58 = vadd.f32 1.0, %v2300_v57 }
0x1cb7   :  { %2301 = vrcp.f32 %v1459_v58 }
0x1cc1   :  { %v2302_v63 = vpop.eup %2301 }
0x1cc2   :  { %v1466_v13 = vmul.f32 %v2302_v63, %v1464_v46  ;;  %v1956_v46 = vld [vmem:[%s2957_s4 + $0x5] ss:$0 sm:$0xff] }
0x1d25   :  { %v1469_v0 = vpop.permute.xlu0 %1468 }
0x1d26   :  { %v1471_v7 = vmul.f32 %v2302_v63, %v1469_v0 }
0x1d28   :  { %1473 = vrot.lane.b32.xlu1 %v1471_v7, %s2386_s11 }
0x1d2c   :  { %1517 = vrot.lane.b32.xlu1 %v1507_v12, %s2386_s11 }
0x1d9a   :  { %v1474_v15 = vpop.permute.xlu1 %1473 }
0x1d9b   :  { %v1476_v16 = vadd.f32 %v1474_v15, %v1466_v13 }
0x1d9d   :  { %2303 = vtanh.f32 %v1476_v16 }
0x1d9e   :  { %v1518_v17 = vpop.permute.xlu1 %1517 }
0x1d9f   :  { %2152 = vmatprep.mubr.msk.bf16.mxu0 %vm108_vm0, %v1518_v17 }
0x1da7   :  { %v2304_v21 = vpop.eup %2303 }
0x1da8   :  { %1479 = vrot.lane.b32.xlu0 %v2304_v21, %s2387_s16 }
0x1e1a   :  { %v1480_v22 = vpop.permute.xlu0 %1479 }
0x1e1b   :  { %v2789_v24 = vmul.f32 %v2302_v63, %v1480_v22  ;;  %v2357_v22 = vld [vmem:[%s2953_s0 + $0x10] sm:$0xff] }
0x1e1d   :  { %v1493_v14 = vrot.slane %v2789_v24, 4 }
0x1e1f   :  { %v1502_v27 = vcombine.low %v2762_v19, %v1493_v14 }
0x1e21   :  { %v1508_v28 = vpack.c.bf16 %v1502_v27, %v1501_v26  ;;  %v2358_v26 = vld [vmem:[%s2953_s0] sm:$0xff] }
0x1e23   :  { %1519 = vrot.lane.b32.xlu0 %v1508_v28, %s2386_s11 }
0x1e95   :  { %v1520_v29 = vpop.permute.xlu0 %1519 }
0x1e96   :  { %2153 = vmatmul.mubr.msk.bf16.vlgmr.msra.gmra.mrb[28].mxu0 %vm108_vm0, %v1520_v29 }
0x1f69   :  { %v2154_v33 = vpop.f32.mrb[28].mxu0 }
0x1f6a   :  { %v1582_v5 = vadd.f32 %v2154_v33, %v1988_v30  ;;  %v1573_v62 = vpop.f32.mrb[29].mxu0 }
0x1f6b   :  { %v1574_v35 = vadd.f32 %v1988_v30, %v1573_v62  ;;  %v2155_v39 = vpop.f32.mrb[30].mxu0 }
0x1f6c   :  { %2305 = vtanh.f32 %v1582_v5  ;;  %v1576_v40 = vpop.f32.mrb[31].mxu0  ;;  %v1585_v31 = vadd.f32 %v2155_v39, %v1988_v30  ;;  %v2836_v5 = vld [vmem:[%s2954_s1 + $0x20] sm:$0xf] }
0x1f6d   :  { %2307 = vtanh.f32 %v1574_v35  ;;  %v1577_v32 = vadd.f32 %v1988_v30, %v1576_v40  ;;  %v1994_v30 = vld [vmem:[%s2957_s4 + $0xa] ss:$0 sm:$0xff]  ;;  %vm1659_vm9 = vcmp.gt.s32.totalorder %v2836_v5, 1  ;;  %vm1663_vm10 = vcmp.gt.s32.totalorder %v2836_v5, 5 }
0x1f6e   :  { %vm1662_vm11 = vcmp.gt.s32.totalorder %v2836_v5, 4  ;;  %vm1658_vm12 = vcmp.gt.s32.totalorder %v2836_v5, 0  ;;  %vm1660_vm13 = vcmp.gt.s32.totalorder %v2836_v5, 2  ;;  %vm1661_vm15 = vcmp.gt.s32.totalorder %v2836_v5, 3 }
0x1f6f   :  { %2309 = vtanh.f32 %v1577_v32  ;;  %vm1664_vm1 = vcmp.gt.s32.totalorder %v2836_v5, 6  ;;  %vm1665_vm2 = vcmp.gt.s32.totalorder %v2836_v5, 7 }
0x1f70   :  { %2311 = vtanh.f32 %v1585_v31 }
0x1f71   :  { %2313 = vtanh.f32 %v657_v41 }
0x1f72   :  { %2315 = vtanh.f32 %v660_v4 }
0x1f76   :  { %v2306_v42 = vpop.eup %2305 }
0x1f77   :  { %v2308_v20 = vpop.eup %2307  ;;  %v1614_v34 = vmul.f32 %v2306_v42, %v1993_v3  ;;  %v1598_v47 = vcombine.high %v2306_v42, %v2306_v42 }
0x1f78   :  { %v1610_v48 = vmul.f32 %v2308_v20, %v1993_v3  ;;  %v1596_v49 = vcombine.high %v2308_v20, %v2308_v20 }
0x1f79   :  { %v2310_v50 = vpop.eup %2309  ;;  %v1631_v11 = vsel %vm1618_vm8, %v1614_v34, 0.0  ;;  %v1615_v36 = vmul.f32 %v1993_v3, %v1598_v47 }
0x1f7a   :  { %1632 = vadd.xlane.f32.xlu0 %v1631_v11  ;;  %v1619_v2 = vsel %vm1618_vm8, %v1610_v48, 0.0  ;;  %v1611_v52 = vmul.f32 %v1993_v3, %v1596_v49  ;;  %v1597_v53 = vcombine.high %v2310_v50, %v2310_v50  ;;  %v2312_v54 = vpop.eup %2311  ;;  %v1612_v56 = vmul.f32 %v2310_v50, %v1993_v3 }
0x1f7b   :  { %1620 = vadd.xlane.f32.xlu1 %v1619_v2  ;;  %v1634_v57 = vsel %vm1618_vm8, %v1615_v36, 0.0  ;;  %v1599_v63 = vcombine.high %v2312_v54, %v2312_v54  ;;  %v1616_v60 = vmul.f32 %v2312_v54, %v1993_v3  ;;  %v2314_v7 = vpop.eup %2313 }
0x1f7c   :  { %v1622_v51 = vsel %vm1618_vm8, %v1611_v52, 0.0  ;;  %v1613_v58 = vmul.f32 %v1993_v3, %v1597_v53  ;;  %v1625_v0 = vsel %vm1618_vm8, %v1612_v56, 0.0  ;;  %v2316_v13 = vpop.eup %2315  ;;  %v671_v16 = vmul.f32 %v2314_v7, %v1956_v46 }
0x1f7d   :  { %v1617_v12 = vmul.f32 %v1993_v3, %v1599_v63  ;;  %v1637_v15 = vsel %vm1618_vm8, %v1616_v60, 0.0  ;;  %v672_v6 = vmul.f32 %v2316_v13, %v1956_v46 }
0x1f7e   :  { %1623 = vadd.xlane.f32.xlu0 %v1622_v51  ;;  %v1628_v10 = vsel %vm1618_vm8, %v1613_v58, 0.0  ;;  %v673_v18 = vsel %vm108_vm0, %v671_v16, 0.0 }
0x1f7f   :  { %1635 = vadd.xlane.f32.xlu1 %v1634_v57  ;;  %v1640_v17 = vsel %vm1618_vm8, %v1617_v12, 0.0  ;;  %v676_v21 = vsel %vm108_vm0, %v672_v6, 0.0 }
0x1f82   :  { %1626 = vadd.xlane.f32.xlu0 %v1625_v0 }
0x1f83   :  { %1629 = vadd.xlane.f32.xlu1 %v1628_v10 }
0x1f86   :  { %1638 = vadd.xlane.f32.xlu0 %v1637_v15 }
0x1f87   :  { %1641 = vadd.xlane.f32.xlu1 %v1640_v17 }
0x1f8a   :  { %674 = vadd.xlane.f32.xlu0 %v673_v18 }
0x1f8b   :  { %677 = vadd.xlane.f32.xlu1 %v676_v21 }
0x1f9c   :  { %703 = vrot.lane.b32.xlu1 %v2357_v22, %s2388_s6 }
0x1fa0   :  { %701 = vrot.lane.b32.xlu0 %v2358_v26, %s2388_s6 }
0x2007   :  { %v1633_v27 = vpop.xlane.xlu0 %1632 }
0x2008   :  { %v1621_v28 = vpop.xlane.xlu1 %1620  ;;  %v1653_v39 = vadd.f32 %v1994_v30, %v1633_v27 }
0x2009   :  { %v1649_v40 = vadd.f32 %v1994_v30, %v1621_v28 }
0x200a   :  { %v1686_v42 = vsel %vm1662_vm11, %v1653_v39, -1e+30 }
0x200b   :  { %v1624_v29 = vpop.xlane.xlu0 %1623  ;;  %v1682_v20 = vsel %vm1658_vm12, %v1649_v40, -1e+30  ;;  %v1695_v36 = vsel %vm1690_vm14, %v1686_v42, -inf  ;;  %v1995_v40 = vsel %vm1658_vm12, 1.0, %v2384_v8 }
0x200c   :  { %v1636_v33 = vpop.xlane.xlu1 %1635  ;;  %v1650_v62 = vadd.f32 %v1994_v30, %v1624_v29  ;;  %v1691_v53 = vsel %vm1690_vm14, %v1682_v20, -inf }
0x200d   :  { %v1654_v35 = vadd.f32 %v1994_v30, %v1636_v33  ;;  %v1696_v7 = vmax.f32 %v1691_v53, %v1695_v36  ;;  %v2000_v53 = vsel %vm1663_vm10, 1.0, %v2384_v8 }
0x200e   :  { %v1683_v41 = vsel %vm1659_vm9, %v1650_v62, -1e+30 }
0x200f   :  { %v1627_v31 = vpop.xlane.xlu0 %1626  ;;  %v1687_v3 = vsel %vm1663_vm10, %v1654_v35, -1e+30  ;;  %v1692_v47 = vsel %vm1690_vm14, %v1683_v41, -inf }
0x2010   :  { %v1651_v32 = vadd.f32 %v1994_v30, %v1627_v31  ;;  %v1630_v1 = vpop.xlane.xlu1 %1629  ;;  %v1697_v48 = vsel %vm1690_vm14, %v1687_v3, -inf  ;;  %v1996_v31 = vsel %vm1659_vm9, 1.0, %v2384_v8 }
0x2011   :  { %v1652_v4 = vadd.f32 %v1994_v30, %v1630_v1  ;;  %v1698_v51 = vmax.f32 %v1692_v47, %v1697_v48  ;;  %v1997_v1 = vsel %vm1660_vm13, 1.0, %v2384_v8  ;;  %v1999_v47 = vsel %vm1662_vm11, 1.0, %v2384_v8 }
0x2012   :  { %v1684_v49 = vsel %vm1660_vm13, %v1651_v32, -1e+30 }
0x2013   :  { %v1639_v34 = vpop.xlane.xlu0 %1638  ;;  %v1685_v2 = vsel %vm1661_vm15, %v1652_v4, -1e+30  ;;  %v1693_v56 = vsel %vm1690_vm14, %v1684_v49, -inf  ;;  %v1703_v12 = vmax.f32 %v1696_v7, %v1698_v51 }
0x2014   :  { %v1655_v50 = vadd.f32 %v1994_v30, %v1639_v34  ;;  %v1642_v11 = vpop.xlane.xlu1 %1641  ;;  %v1694_v63 = vsel %vm1690_vm14, %v1685_v2, -inf }
0x2015   :  { %v1656_v52 = vadd.f32 %v1994_v30, %v1642_v11  ;;  %v1957_v11 = vld [vmem:[%s2957_s4 + $0x6] ss:$0 sm:$0xff]  ;;  %s2389_s4 = smov [#allocation2]  }
0x2016   :  { %v1688_v54 = vsel %vm1664_vm1, %v1655_v50, -1e+30 }
0x2017   :  { %v1699_v57 = vsel %vm1690_vm14, %v1688_v54, -inf  ;;  %v1689_v58 = vsel %vm1665_vm2, %v1656_v52, -1e+30 }
0x2018   :  { %v1700_v0 = vmax.f32 %v1693_v56, %v1699_v57  ;;  %v1701_v60 = vsel %vm1690_vm14, %v1689_v58, -inf }
0x2019   :  { %v1702_v10 = vmax.f32 %v1694_v63, %v1701_v60  ;;  %v2001_v63 = vsel %vm1664_vm1, 1.0, %v2384_v8 }
0x201b   :  { %v1704_v46 = vmax.f32 %v1700_v0, %v1702_v10 }
0x201d   :  { %v1705_v13 = vmax.f32 %v1703_v12, %v1704_v46 }
0x201f   :  { %v1706_v15 = vsub.f32 %v1682_v20, %v1705_v13  ;;  %v1707_v16 = vsub.f32 %v1683_v41, %v1705_v13  ;;  %v1708_v17 = vsub.f32 %v1684_v49, %v1705_v13  ;;  %v1709_v6 = vsub.f32 %v1685_v2, %v1705_v13  ;;  %v675_v2 = vpop.xlane.xlu0 %674 }
0x2020   :  { %v1710_v18 = vsub.f32 %v1686_v42, %v1705_v13  ;;  %v1711_v27 = vsub.f32 %v1687_v3, %v1705_v13  ;;  %v1712_v29 = vsub.f32 %v1688_v54, %v1705_v13  ;;  %v1713_v33 = vsub.f32 %v1689_v58, %v1705_v13  ;;  %v678_v54 = vpop.xlane.xlu1 %677 }
0x2021   :  { %v1714_v21 = vmul.f32 1.442695, %v1706_v15  ;;  %v1716_v22 = vmul.f32 1.442695, %v1707_v16  ;;  %v1718_v26 = vmul.f32 1.442695, %v1708_v17  ;;  %v685_v0 = vadd.f32 %v1957_v11, %v675_v2 }
0x2022   :  { %v1720_v28 = vmul.f32 1.442695, %v1709_v6  ;;  %v1722_v30 = vmul.f32 1.442695, %v1710_v18  ;;  %v1724_v62 = vmul.f32 1.442695, %v1711_v27  ;;  %v686_v10 = vadd.f32 %v1957_v11, %v678_v54 }
0x2023   :  { %2317 = vpow2.f32 %v1714_v21  ;;  %v1726_v35 = vmul.f32 1.442695, %v1712_v29  ;;  %v1728_v39 = vmul.f32 1.442695, %v1713_v33  ;;  %v1998_v3 = vsel %vm1661_vm15, 1.0, %v2384_v8  ;;  %v702_v11 = vpop.permute.xlu0 %701 }
0x2024   :  { %2319 = vpow2.f32 %v1716_v22  ;;  %v2002_v15 = vsel %vm1665_vm2, 1.0, %v2384_v8  ;;  %v1958_v18 = vmul.f32 -1.442695, %v685_v0  ;;  %v704_v2 = vpop.permute.xlu1 %703 }
0x2025   :  { %2321 = vpow2.f32 %v1718_v26  ;;  %v1959_v26 = vmul.f32 -1.442695, %v686_v10 }
0x2026   :  { %2323 = vpow2.f32 %v1720_v28 }
0x2027   :  { %2325 = vpow2.f32 %v1722_v30 }
0x2028   :  { %2327 = vpow2.f32 %v1724_v62 }
0x2029   :  { %2329 = vpow2.f32 %v1726_v35 }
0x202a   :  { %2331 = vpow2.f32 %v1728_v39 }
0x202b   :  { %2333 = vpow2.f32 %v1958_v18 }
0x202c   :  { %2335 = vpow2.f32 %v1959_v26 }
0x202d   :  { %v2318_v32 = vpop.eup %2317 }
0x202e   :  { %v2320_v41 = vpop.eup %2319  ;;  %v1730_v4 = vmul.f32 %v2318_v32, %v1995_v40 }
0x202f   :  { %v2322_v42 = vpop.eup %2321  ;;  %v1731_v20 = vmul.f32 %v2320_v41, %v1996_v31 }
0x2030   :  { %v2324_v34 = vpop.eup %2323  ;;  %v1732_v48 = vmul.f32 %v2322_v42, %v1997_v1  ;;  %v1738_v49 = vsel %vm1690_vm14, %v1730_v4, 0.0 }
0x2031   :  { %v2326_v50 = vpop.eup %2325  ;;  %v1733_v52 = vmul.f32 %v2324_v34, %v1998_v3  ;;  %v1739_v36 = vsel %vm1690_vm14, %v1731_v20, 0.0 }
0x2032   :  { %v1740_v51 = vadd.f32 %v1739_v36, %v1738_v49  ;;  %v1734_v56 = vmul.f32 %v2326_v50, %v1999_v47  ;;  %v1741_v57 = vsel %vm1690_vm14, %v1732_v48, 0.0  ;;  %v2328_v58 = vpop.eup %2327 }
0x2033   :  { %v2330_v7 = vpop.eup %2329  ;;  %v1735_v12 = vmul.f32 %v2328_v58, %v2000_v53  ;;  %v1743_v46 = vsel %vm1690_vm14, %v1733_v52, 0.0 }
0x2034   :  { %v1742_v60 = vadd.f32 %v1741_v57, %v1740_v51  ;;  %v2332_v13 = vpop.eup %2331  ;;  %v1736_v17 = vmul.f32 %v2330_v7, %v2001_v63  ;;  %v1745_v6 = vsel %vm1690_vm14, %v1734_v56, 0.0 }
0x2035   :  { %v1737_v22 = vmul.f32 %v2332_v13, %v2002_v15  ;;  %v1747_v27 = vsel %vm1690_vm14, %v1735_v12, 0.0  ;;  %v2334_v8 = vpop.eup %2333 }
0x2036   :  { %v1744_v16 = vadd.f32 %v1743_v46, %v1742_v60  ;;  %v1749_v29 = vsel %vm1690_vm14, %v1736_v17, 0.0  ;;  %v2336_v62 = vpop.eup %2335  ;;  %v693_v35 = vadd.f32 1.0, %v2334_v8 }
0x2037   :  { %v1751_v33 = vsel %vm1690_vm14, %v1737_v22, 0.0  ;;  %v694_v40 = vadd.f32 1.0, %v2336_v62 }
0x2038   :  { %v1746_v21 = vadd.f32 %v1745_v6, %v1744_v16 }
0x203a   :  { %v1748_v28 = vadd.f32 %v1747_v27, %v1746_v21 }
0x203c   :  { %v1750_v30 = vadd.f32 %v1749_v29, %v1748_v28 }
0x203e   :  { %v1752_v5 = vadd.f32 %v1751_v33, %v1750_v30 }
0x2040   :  { %2337 = vrcp.f32 %v1752_v5 }
0x2041   :  { %2339 = vrcp.f32 %v693_v35 }
0x2042   :  { %2341 = vrcp.f32 %v694_v40 }
0x204a   :  { %v2338_v39 = vpop.eup %2337 }
0x204b   :  { %v1755_v31 = vmul.f32 %v2338_v39, %v1731_v20  ;;  %v1754_v32 = vmul.f32 %v2338_v39, %v1730_v4  ;;  %v1756_v1 = vmul.f32 %v2338_v39, %v1732_v48  ;;  %v1757_v41 = vmul.f32 %v2338_v39, %v1733_v52  ;;  %v2340_v34 = vpop.eup %2339 }
0x204c   :  { %v1758_v3 = vmul.f32 %v2338_v39, %v1734_v56  ;;  %v1759_v42 = vmul.f32 %v2338_v39, %v1735_v12  ;;  %v1760_v47 = vmul.f32 %v2338_v39, %v1736_v17  ;;  %v1761_v49 = vmul.f32 %v2338_v39, %v1737_v22  ;;  %v2342_v50 = vpop.eup %2341 }
0x204d   :  { %1769 = vperm.xlu1 %2163, %v1755_v31   ;;  %1764 = vperm.xlu0 %2164, %v1754_v32   ;;  %v707_v4 = vmul.f32 %v2340_v34, %v702_v11  ;;  %v708_v20 = vmul.f32 %v2342_v50, %v704_v2 }
0x2051   :  { %1774 = vperm.xlu1 %2163, %v1756_v1   ;;  %1779 = vperm.xlu0 %2164, %v1757_v41  }
0x2055   :  { %1784 = vperm.xlu1 %2163, %v1758_v3   ;;  %1789 = vperm.xlu0 %2164, %v1759_v42  }
0x2059   :  { %1794 = vperm.xlu1 %2163, %v1760_v47   ;;  %1799 = vperm.xlu0 %2164, %v1761_v49  }
0x205d   :  { %716 = vperm.xlu0 %2164, %v708_v20   ;;  %711 = vperm.xlu1 %2163, %v707_v4  }
0x20cc   :  { %v1770_v48 = vpop.permute.xlu1 %1769  ;;  %v1765_v52 = vpop.permute.xlu0 %1764 }
0x20cd   :  { %v1803_v36 = vmul.f32 %v1770_v48, %v1484_v61  ;;  %v1802_v53 = vmul.f32 %v1765_v52, %v2675_v23 }
0x20cf   :  { %v1812_v54 = vsel %vm1810_vm3, %v1803_v36, 0.0  ;;  %v1811_v51 = vsel %vm1810_vm3, %v1802_v53, 0.0 }
0x20d0   :  { %v1775_v56 = vpop.permute.xlu1 %1774  ;;  %v1780_v57 = vpop.permute.xlu0 %1779  ;;  %v1813_v0 = vadd.f32 %v1812_v54, %v1811_v51 }
0x20d1   :  { %v1804_v58 = vmul.f32 %v1775_v56, %v2706_v9  ;;  %v1805_v63 = vmul.f32 %v1780_v57, %v1487_v59 }
0x20d3   :  { %v1814_v60 = vsel %vm1810_vm3, %v1804_v58, 0.0  ;;  %v1816_v61 = vsel %vm1810_vm3, %v1805_v63, 0.0 }
0x20d4   :  { %v1815_v7 = vadd.f32 %v1814_v60, %v1813_v0  ;;  %v1785_v10 = vpop.permute.xlu1 %1784  ;;  %v1790_v43 = vpop.permute.xlu0 %1789 }
0x20d5   :  { %v1806_v23 = vmul.f32 %v1785_v10, %v2737_v55  ;;  %v1807_v12 = vmul.f32 %v1790_v43, %v1490_v38 }
0x20d6   :  { %v1817_v46 = vadd.f32 %v1816_v61, %v1815_v7 }
0x20d7   :  { %v1818_v13 = vsel %vm1810_vm3, %v1806_v23, 0.0  ;;  %v1820_v59 = vsel %vm1810_vm3, %v1807_v12, 0.0 }
0x20d8   :  { %v1819_v9 = vadd.f32 %v1818_v13, %v1817_v46  ;;  %v1795_v15 = vpop.permute.xlu1 %1794  ;;  %v1800_v37 = vpop.permute.xlu0 %1799 }
0x20d9   :  { %v1808_v16 = vmul.f32 %v1795_v15, %v2762_v19  ;;  %v1809_v17 = vmul.f32 %v1800_v37, %v1493_v14 }
0x20da   :  { %v1821_v6 = vadd.f32 %v1820_v59, %v1819_v9 }
0x20db   :  { %v1822_v18 = vsel %vm1810_vm3, %v1808_v16, 0.0  ;;  %v1824_v25 = vsel %vm1810_vm3, %v1809_v17, 0.0 }
0x20dc   :  { %v1823_v55 = vadd.f32 %v1822_v18, %v1821_v6  ;;  %v712_v21 = vpop.permute.xlu1 %711  ;;  %v717_v22 = vpop.permute.xlu0 %716 }
0x20dd   :  { %v719_v26 = vmul.f32 %v712_v21, %v2620_v44  ;;  %v720_v27 = vmul.f32 %v717_v22, %v2622_v45 }
0x20de   :  { %v1825_v38 = vadd.f32 %v1824_v25, %v1823_v55 }
0x20df   :  { %v721_v19 = vsel %vm108_vm0, %v719_v26, 0.0  ;;  %v728_v24 = vsel %vm108_vm0, %v720_v27, 0.0  ;;  %vm1841_vm0 = vcmask 1041409  }
0x20e0   :  { %2343 = vtanh.f32 %v1825_v38  ;;  %v722_v14 = vrot.slane %v721_v19, 4  ;;  %v729_v29 = vrot.slane %v728_v24, 4 }
0x20e2   :  { %v723_v30 = vadd.f32 %v722_v14, %v721_v19  ;;  %v730_v33 = vadd.f32 %v729_v29, %v728_v24 }
0x20e4   :  { %v724_v8 = vrot.slane %v723_v30, 2  ;;  %v731_v62 = vrot.slane %v730_v33, 2 }
0x20e6   :  { %v725_v44 = vadd.f32 %v724_v8, %v723_v30  ;;  %v732_v45 = vadd.f32 %v731_v62, %v730_v33 }
0x20e8   :  { %v726_v31 = vrot.slane %v725_v44, 1  ;;  %v733_v32 = vrot.slane %v732_v45, 1 }
0x20ea   :  { %v2344_v28 = vpop.eup %2343  ;;  %v727_v41 = vadd.f32 %v726_v31, %v725_v44  ;;  %v734_v3 = vadd.f32 %v733_v32, %v732_v45 }
0x20eb   :  { %2345 = vtanh.f32 %v2344_v28 }
0x20ec   :  { %2347 = vtanh.f32 %v727_v41 }
0x20ed   :  { %2349 = vtanh.f32 %v734_v3 }
0x20f5   :  { %v2346_v5 = vpop.eup %2345 }
0x20f6   :  { %v1858_v35 = vmul.f32 %v2346_v5, %v2346_v5  ;;  %v1829_v39 = vrot.slane %v2346_v5, 1  ;;  %v1872_v40 = vrot.slane %v2346_v5, 3  ;;  %v1871_v1 = vrot.slane %v2346_v5, 2  ;;  %v2348_v42 = vpop.eup %2347 }
0x20f7   :  { %v2350_v34 = vpop.eup %2349  ;;  %v1848_v47 = vmul.f32 %v2348_v42, %v2348_v42 }
0x20f8   :  { %1860 = vrot.lane.b32.xlu1 %v1858_v35, %s2386_s11  ;;  %1832 = vrot.lane.b32.xlu0 %v1829_v39, %s2386_s11  ;;  %v1849_v49 = vmul.f32 %v2350_v34, %v2350_v34 }
0x20fa   :  { %v1852_v50 = vsel %vm1841_vm0, %v1849_v49, %v1848_v47 }
0x20fb   :  { %v1854_v11 = vsel %vm1844_vm4, %v1852_v50, 0.0 }
0x20fc   :  { %1830 = vrot.lane.b32.xlu1 %v2346_v5, %s2386_s11  ;;  %1875 = vrot.lane.b32.xlu0 %v1872_v40, %s2386_s11 }
0x2100   :  { %1873 = vrot.lane.b32.xlu1 %v1871_v1, %s2386_s11  ;;  %s1920_s11 = sshll.u32 %s2389_s4, 4  ;;  %s1921_s11 = int_to_ptr.vmem [resolvable:$true] %s1920_s11 }
0x2101   :  { %s2359_s13 = scalar_lea.vmem %s1921_s11, 16  ;;  %s2363_s14 = scalar_lea.vmem %s1921_s11, 32 }
0x2102   :  { %p2360_p0 = scmp.ne.s32.totalorder %s1921_s11, %s2359_s13  ;;  %p2364_p1 = scmp.lt.s32.totalorder %s1921_s11, %s1921_s11 }
0x2103   :  { %p2365_p2 = scmp.lt.s32.totalorder %s2363_s14, %s2359_s13 }
0x2105   :  { %p2366_p3 = por %p2365_p2, %p2364_p1 }
0x2107   :  { %p2367_p4 = pnand %p2366_p3, %p2360_p0 }
0x211b   :  { %1855 = vadd.xlane.f32.xlu0 %v1854_v11 }
0x216a   :  { %v1861_v2 = vpop.permute.xlu1 %1860  ;;  %v1833_v4 = vpop.permute.xlu0 %1832 }
0x216b   :  { %v1837_v20 = vmul.f32 %v2350_v34, %v1833_v4  ;;  %v1863_v48 = vsel %vm1844_vm4, %v1861_v2, 0.0  ;;  %v1890_v52 = vsel %vm1889_vm5, %v1861_v2, 0.0 }
0x216c   :  { %1864 = vadd.xlane.f32.xlu1 %v1863_v48  ;;  %1891 = vadd.xlane.f32.xlu0 %v1890_v52 }
0x216d   :  { %v1840_v54 = vrot.slane %v1837_v20, 7 }
0x216e   :  { %v1831_v36 = vpop.permute.xlu1 %1830  ;;  %v1876_v53 = vpop.permute.xlu0 %1875 }
0x216f   :  { %v1836_v51 = vmul.f32 %v2348_v42, %v1831_v36  ;;  %v1880_v56 = vmul.f32 %v2350_v34, %v1876_v53 }
0x2171   :  { %v1842_v57 = vsel %vm1841_vm0, %v1840_v54, %v1836_v51  ;;  %v1883_v0 = vrot.slane %v1880_v56, 7 }
0x2172   :  { %v1874_v58 = vpop.permute.xlu1 %1873  ;;  %v1845_v63 = vsel %vm1844_vm4, %v1842_v57, 0.0 }
0x2173   :  { %v1879_v60 = vmul.f32 %v2348_v42, %v1874_v58  ;;  %1846 = vadd.xlane.f32.xlu0 %v1845_v63 }
0x2175   :  { %v1884_v7 = vsel %vm1841_vm0, %v1883_v0, %v1879_v60 }
0x2176   :  { %v1886_v10 = vsel %vm1844_vm4, %v1884_v7, 0.0 }
0x2177   :  { %1887 = vadd.xlane.f32.xlu1 %v1886_v10 }
0x21a8   :  { %v1856_v43 = vpop.xlane.xlu0 %1855 }
0x21a9   :  { %v1857_v61 = vmax.f32 %v1856_v43, 1e-16 }
0x21ab   :  { %2351 = vrsqrt.f32 %v1857_v61 }
0x21b5   :  { %v2352_v15 = vpop.eup %2351 }
0x21f9   :  { %v1865_v23 = vpop.xlane.xlu1 %1864  ;;  %v1892_v12 = vpop.xlane.xlu0 %1891 }
0x21fa   :  { %v1866_v46 = vmax.f32 %v1865_v23, 1e-16  ;;  %v1893_v13 = vmax.f32 %v1892_v12, 1e-16 }
0x21fc   :  { %2353 = vrsqrt.f32 %v1866_v46 }
0x21fd   :  { %2355 = vrsqrt.f32 %v1893_v13 }
0x2200   :  { %v1847_v9 = vpop.xlane.xlu0 %1846 }
0x2201   :  { %v1868_v37 = vmul.f32 %v2352_v15, %v1847_v9 }
0x2204   :  { %v1888_v59 = vpop.xlane.xlu1 %1887 }
0x2205   :  { %v1894_v55 = vmul.f32 %v2352_v15, %v1888_v59 }
0x2206   :  { %v2354_v16 = vpop.eup %2353 }
0x2207   :  { %v2356_v17 = vpop.eup %2355  ;;  %v1870_v6 = vmul.f32 %v2354_v16, %v1868_v37 }
0x2208   :  { %v1897_v18 = vrot.slane %v2356_v17, 2 }
0x2209   :  { %v1900_v25 = vsub.f32 0.6, %v1870_v6 }
0x220a   :  { %v1899_v38 = vmul.f32 %v1897_v18, %v1894_v55 }
0x220c   :  { %v1901_v21 = vadd.f32 %v1900_v25, %v1899_v38 }
0x220e   :  { %v1902_v22 = vmax.f32 %v1901_v21, 1e-06 }
0x2210   :  { %v1904_v26 = vsel %vm1903_vm6, %v1902_v22, 0.0 }
0x2211   :  { %v1905_v27 = vrot.slane %v1904_v26, 4 }
0x2213   :  { %v1906_v28 = vadd.f32 %v1905_v27, %v1904_v26 }
0x2215   :  { %v1907_v19 = vrot.slane %v1906_v28, 2 }
0x2217   :  { %v1908_v24 = vadd.f32 %v1907_v19, %v1906_v28 }
0x2219   :  { %v1909_v14 = vrot.slane %v1908_v24, 1 }
0x221b   :  { %v1910_v29 = vadd.f32 %v1909_v14, %v1908_v24 }
0x221d   :  { %v1911_v30 = vmul.f32 0.5, %v1910_v29 }
0x221f   :  { %1913 = vst.msk [vmem:[#allocation2] sm:$0x1] %vm1912_vm7, %v1911_v30 }
0x2220   :  { %2370 = shalt.err (!%p2367_p4)
}
0x2221   :  { %s2371_s18 = scalar_lea.hbm %s2958_s5, 16 }
0x2222   :  { %p2372_p5 = scmp.ne.s32.totalorder %s2958_s5, %s2371_s18  ;;  %p2375_p6 = scmp.lt.u32.totalorder %s2371_s18, %s2958_s5 }
0x2224   :  { %p2377_p7 = pnand %p2375_p6, %p2372_p5 }
0x2226   :  { %2380 = shalt.err (!%p2377_p7)
}
0x2227   :  { %1923 = dma.vmem_to_hbm [thread:$0]  %s1921_s11, 16, %s2958_s5, [#allocation3]  }
0x2228   :  { %2381 = dma.done.wait [#allocation3], 16  }
0x2229   :  { %2382 = vsyncadd [#allocation3], 4294967280 }
0x222a   :  { %1927 = vsyncpa [#allocation3], 1 }

</bundles_post_ra>
